<compile_context>
chip_gen: v6e
topology: v6e:2x2x1
jax: 0.10.0
libtpu: 0.0.40
codegen_flags: <defaults>
</compile_context>

<pallas_src>
import math
import functools

import jax
import jax.numpy as jnp
from jax.experimental import pallas as pl
from jax.experimental.pallas import tpu as pltpu

EPS = 1e-5  # nn.LayerNorm default


def _layernorm(x, gamma, beta):
    mu = jnp.mean(x, axis=-1, keepdims=True)
    var = jnp.mean((x - mu) ** 2, axis=-1, keepdims=True)
    return (x - mu) * jax.lax.rsqrt(var + EPS) * gamma + beta


def _encoder_stack_kernel(x_ref, lens_ref,                       # (B,S,D) f32, (B,1,1) i32
                          wq_ref, wk_ref, wv_ref, wo_ref,        # (1,D,D) bf16
                          bq_ref, bk_ref, bv_ref, bo_ref,        # (1,1,D) f32
                          w1_ref, b1_ref,                        # (1,D,H) bf16, (1,1,H) f32
                          w2_ref, b2_ref,                        # (1,H,D) bf16, (1,1,D) f32
                          g0_ref, be0_ref, g1_ref, be1_ref,      # (1,1,D) f32 LN params
                          gf_ref, bf_ref,                        # (1,D) f32 final LN
                          o_ref,                                 # (B,S,D) f32, resident
                          *, num_heads, normalize):
    l = pl.program_id(0)
    B, S, D = x_ref.shape
    hd = D // num_heads
    scale = 1.0 / math.sqrt(hd)
    mm_dtype = wq_ref.dtype

    # Layer 0: seed the resident activation block from the embedded input.
    @pl.when(l == 0)
    def _():
        o_ref[...] = x_ref[...]

    x3 = o_ref[...]                         # (B, S, D) f32, carried across layers in VMEM
    x2 = x3.reshape(B * S, D)               # fold batch into sublanes
    xm = x2.astype(mm_dtype)

    wq = wq_ref[0]; wk = wk_ref[0]; wv = wv_ref[0]; wo = wo_ref[0]
    bq = bq_ref[0]; bk = bk_ref[0]; bv = bv_ref[0]; bo = bo_ref[0]

    # ---- Multihead self attention (post-norm: the "before" LN is identity) ----
    q = (jnp.dot(xm, wq, preferred_element_type=jnp.float32) + bq) * scale
    k = jnp.dot(xm, wk, preferred_element_type=jnp.float32) + bk
    v = jnp.dot(xm, wv, preferred_element_type=jnp.float32) + bv

    q3 = q.reshape(B, S, D).astype(mm_dtype)
    k3 = k.reshape(B, S, D).astype(mm_dtype)
    v3 = v.reshape(B, S, D).astype(mm_dtype)

    # Key-padding mask from src_lengths: key position j is masked iff j >= length[b].
    col_ids = jax.lax.broadcasted_iota(jnp.int32, (B, 1, S), 2)
    key_pad = col_ids >= lens_ref[...]                    # (B, 1, S) bool
    neg = jnp.float32(-1e30)                              # finite sentinel (NaN-proof)

    attn = jnp.zeros((B * S, D), jnp.float32) + bo        # fold out_proj bias in
    for h in range(num_heads):                            # small static head loop,
        lo = h * hd                                       # batched over B inside
        qh = q3[:, :, lo:lo + hd]
        kh = k3[:, :, lo:lo + hd]
        vh = v3[:, :, lo:lo + hd]
        s = jnp.einsum('bqd,bkd->bqk', qh, kh,
                       preferred_element_type=jnp.float32)          # (B, S, S)
        s = jnp.where(key_pad, neg, s)
        m = jnp.max(s, axis=-1, keepdims=True)
        p = jnp.exp(s - m)
        denom = jnp.sum(p, axis=-1, keepdims=True)
        p = p * pl.reciprocal(denom, approx=True)
        oh = jnp.einsum('bqk,bkd->bqd', p.astype(mm_dtype), vh,
                        preferred_element_type=jnp.float32)          # (B, S, hd)
        # concat-of-heads followed by out_proj == sum over per-head slices of W_o
        attn = attn + jnp.dot(oh.reshape(B * S, hd).astype(mm_dtype),
                              wo[lo:lo + hd, :],
                              preferred_element_type=jnp.float32)

    x2 = x2 + attn                                        # dropout == identity (eval)
    x2 = _layernorm(x2, g0_ref[0], be0_ref[0])            # layer_norms[0], after=True

    # ---- Feed-forward block ----
    residual = x2
    h1 = jnp.maximum(
        jnp.dot(x2.astype(mm_dtype), w1_ref[0],
                preferred_element_type=jnp.float32) + b1_ref[0], 0.0)
    h2 = jnp.dot(h1.astype(mm_dtype), w2_ref[0],
                 preferred_element_type=jnp.float32) + b2_ref[0]
    x2 = residual + h2
    x2 = _layernorm(x2, g1_ref[0], be1_ref[0])            # layer_norms[1], after=True

    o_ref[...] = x2.reshape(B, S, D)

    # ---- Final LayerNorm fused into the last layer's epilogue ----
    if normalize:
        @pl.when(l == pl.num_programs(0) - 1)
        def _():
            y = o_ref[...].reshape(B * S, D)
            o_ref[...] = _layernorm(y, gf_ref[...], bf_ref[...]).reshape(B, S, D)


PARAM_ORDER = ('wq', 'wk', 'wv', 'wo', 'bq', 'bk', 'bv', 'bo',
               'w1', 'b1', 'w2', 'b2', 'g0', 'be0', 'g1', 'be1')
_BF16_PARAMS = frozenset(('wq', 'wk', 'wv', 'wo', 'w1', 'w2'))


def encoder_forward(src_tokens, src_lengths, params, args):
    """Equivalent of Encoder.forward: returns (encoder_out, src_lengths)."""
    D = args['encoder_embed_dim']
    nh = args['encoder_attention_heads']
    normalize = bool(args['output_normalize'])

    # embedding lookup + scale (glue in plain JAX); dropout == identity at eval
    x = math.sqrt(D) * params['embedding'][src_tokens]        # (B, S, D) float32
    B, S, _ = x.shape
    L = len(params['layers'])

    # Stack per-layer params along a leading layer axis; matmul weights stored as bf16.
    def stack(name):
        a = jnp.stack([lp[name] for lp in params['layers']], axis=0)
        return a.astype(jnp.bfloat16) if name in _BF16_PARAMS else a

    weights = [stack(name) for name in PARAM_ORDER]
    gF = params['ln_g'].reshape(1, D).astype(jnp.float32)
    bF = params['ln_b'].reshape(1, D).astype(jnp.float32)
    lens = src_lengths.astype(jnp.int32).reshape(B, 1, 1)

    def full_spec(a):                    # whole array, constant across the layer grid
        nd = a.ndim
        return pl.BlockSpec(a.shape, lambda l, _nd=nd: (0,) * _nd)

    def layer_spec(a):                   # leading axis indexed by the layer grid step
        nd = a.ndim
        return pl.BlockSpec((1,) + a.shape[1:], lambda l, _nd=nd: (l,) + (0,) * (_nd - 1))

    in_specs = [full_spec(x), full_spec(lens)]
    in_specs += [layer_spec(w) for w in weights]
    in_specs += [full_spec(gF), full_spec(bF)]

    kernel = functools.partial(_encoder_stack_kernel, num_heads=nh, normalize=normalize)
    out = pl.pallas_call(
        kernel,
        out_shape=jax.ShapeDtypeStruct((B, S, D), jnp.float32),
        grid=(L,),
        in_specs=in_specs,
        # Constant block index across the layer axis -> x stays resident in VMEM, single
        # HBM writeback at the end.  Layer axis is sequential, hence "arbitrary".
        out_specs=pl.BlockSpec((B, S, D), lambda l: (0, 0, 0)),
        compiler_params=pltpu.CompilerParams(dimension_semantics=("arbitrary",)),
    )(x, lens, *weights, gF, bF)
    return out, src_lengths


# ------------------------- deterministic parameter init -------------------------
def _xavier_uniform(key, shape):
    fan_in, fan_out = shape
    bound = math.sqrt(6.0 / (fan_in + fan_out))
    return jax.random.uniform(key, shape, jnp.float32, -bound, bound)


def init_params(key, vocab_size, args):
    D = args['encoder_embed_dim']
    H = args['encoder_hidden_dim']
    L = args['encoder_layers']
    keys = jax.random.split(key, 1 + L)
    params = {'embedding': jax.random.normal(keys[0], (vocab_size, D), jnp.float32)}
    layers = []
    for li in range(L):
        k = jax.random.split(keys[1 + li], 6)
        layers.append(dict(
            wq=_xavier_uniform(k[0], (D, D)), wk=_xavier_uniform(k[1], (D, D)),
            wv=_xavier_uniform(k[2], (D, D)), wo=_xavier_uniform(k[3], (D, D)),
            bq=jnp.zeros((1, D), jnp.float32), bk=jnp.zeros((1, D), jnp.float32),
            bv=jnp.zeros((1, D), jnp.float32), bo=jnp.zeros((1, D), jnp.float32),
            w1=_xavier_uniform(k[4], (D, H)), b1=jnp.zeros((1, H), jnp.float32),
            w2=_xavier_uniform(k[5], (H, D)), b2=jnp.zeros((1, D), jnp.float32),
            g0=jnp.ones((1, D), jnp.float32), be0=jnp.zeros((1, D), jnp.float32),
            g1=jnp.ones((1, D), jnp.float32), be1=jnp.zeros((1, D), jnp.float32),
        ))
    params['layers'] = layers
    params['ln_g'] = jnp.ones((D,), jnp.float32)
    params['ln_b'] = jnp.zeros((D,), jnp.float32)
    return params


if __name__ == "__main__":
    args = dict(
        encoder_embed_dim=32,
        encoder_attention_heads=4,
        encoder_hidden_dim=64,
        encoder_layers=2,
        dropout=0.0,
        attention_dropout=0.0,
        encoder_normalize_before=False,
        output_normalize=True,
    )
    B, S, vocab_size = 2, 8, 50

    key = jax.random.PRNGKey(0)
    k_params, k_tok = jax.random.split(key)
    params = init_params(k_params, vocab_size, args)

    src_tokens = jax.random.randint(k_tok, (B, S), 0, vocab_size, dtype=jnp.int32)
    src_lengths = jnp.array([8, 5], dtype=jnp.int32)

    # TODO(synk): dropout layers are identity here (inference semantics); training-mode
    # dropout masks are not implemented.
    out, out_lengths = encoder_forward(src_tokens, src_lengths, params, args)
    out = jax.block_until_ready(out)
    assert out.shape == (B, S, args['encoder_embed_dim'])
    assert bool(jnp.all(jnp.isfinite(out)))
    print("KERNEL_OK")
</pallas_src>

<mosaic_0001>
module attributes {stable_mosaic.version = 11 : i64} {
  func.func @_encoder_stack_kernel(%arg0: i32, %arg1: memref<2x8x32xf32, #tpu.memory_space<vmem>>, %arg2: memref<2x1x1xi32, #tpu.memory_space<vmem>>, %arg3: memref<1x32x32xbf16, #tpu.memory_space<vmem>>, %arg4: memref<1x32x32xbf16, #tpu.memory_space<vmem>>, %arg5: memref<1x32x32xbf16, #tpu.memory_space<vmem>>, %arg6: memref<1x32x32xbf16, #tpu.memory_space<vmem>>, %arg7: memref<1x1x32xf32, #tpu.memory_space<vmem>>, %arg8: memref<1x1x32xf32, #tpu.memory_space<vmem>>, %arg9: memref<1x1x32xf32, #tpu.memory_space<vmem>>, %arg10: memref<1x1x32xf32, #tpu.memory_space<vmem>>, %arg11: memref<1x32x64xbf16, #tpu.memory_space<vmem>>, %arg12: memref<1x1x64xf32, #tpu.memory_space<vmem>>, %arg13: memref<1x64x32xbf16, #tpu.memory_space<vmem>>, %arg14: memref<1x1x32xf32, #tpu.memory_space<vmem>>, %arg15: memref<1x1x32xf32, #tpu.memory_space<vmem>>, %arg16: memref<1x1x32xf32, #tpu.memory_space<vmem>>, %arg17: memref<1x1x32xf32, #tpu.memory_space<vmem>>, %arg18: memref<1x1x32xf32, #tpu.memory_space<vmem>>, %arg19: memref<1x32xf32, #tpu.memory_space<vmem>>, %arg20: memref<1x32xf32, #tpu.memory_space<vmem>>, %arg21: memref<2x8x32xf32, #tpu.memory_space<vmem>>) attributes {dimension_semantics = [#tpu.dimension_semantics<arbitrary>], iteration_bounds = array<i64: 2>, scalar_prefetch = 0 : i64, scratch_operands = 0 : i64, tpu.core_type = #tpu.core_type<tc>, window_params = [{pipeline_mode = #tpu.pipeline_mode<synchronous>, transform_indices = @transform_0, window_bounds = array<i64: 2, 8, 32>}, {pipeline_mode = #tpu.pipeline_mode<synchronous>, transform_indices = @transform_1, window_bounds = array<i64: 2, 1, 1>}, {transform_indices = @transform_2, window_bounds = array<i64: 1, 32, 32>}, {transform_indices = @transform_3, window_bounds = array<i64: 1, 32, 32>}, {transform_indices = @transform_4, window_bounds = array<i64: 1, 32, 32>}, {transform_indices = @transform_5, window_bounds = array<i64: 1, 32, 32>}, {transform_indices = @transform_6, window_bounds = array<i64: 1, 1, 32>}, {transform_indices = @transform_7, window_bounds = array<i64: 1, 1, 32>}, {transform_indices = @transform_8, window_bounds = array<i64: 1, 1, 32>}, {transform_indices = @transform_9, window_bounds = array<i64: 1, 1, 32>}, {transform_indices = @transform_10, window_bounds = array<i64: 1, 32, 64>}, {transform_indices = @transform_11, window_bounds = array<i64: 1, 1, 64>}, {transform_indices = @transform_12, window_bounds = array<i64: 1, 64, 32>}, {transform_indices = @transform_13, window_bounds = array<i64: 1, 1, 32>}, {transform_indices = @transform_14, window_bounds = array<i64: 1, 1, 32>}, {transform_indices = @transform_15, window_bounds = array<i64: 1, 1, 32>}, {transform_indices = @transform_16, window_bounds = array<i64: 1, 1, 32>}, {transform_indices = @transform_17, window_bounds = array<i64: 1, 1, 32>}, {pipeline_mode = #tpu.pipeline_mode<synchronous>, transform_indices = @transform_18, window_bounds = array<i64: 1, 32>}, {pipeline_mode = #tpu.pipeline_mode<synchronous>, transform_indices = @transform_19, window_bounds = array<i64: 1, 32>}, {pipeline_mode = #tpu.pipeline_mode<synchronous>, transform_indices = @transform_20, window_bounds = array<i64: 2, 8, 32>}]} {
    %c0_i32 = arith.constant 0 : i32
    %0 = arith.cmpi eq, %arg0, %c0_i32 : i32
    %1 = arith.extui %0 : i1 to i32
    %c0_i32_0 = arith.constant 0 : i32
    %2 = arith.cmpi ne, %1, %c0_i32_0 : i32
    scf.if %2 {
      %c0_99 = arith.constant 0 : index
      %c0_100 = arith.constant 0 : index
      %c0_101 = arith.constant 0 : index
      %223 = vector.load %arg1[%c0_99, %c0_100, %c0_101] : memref<2x8x32xf32, #tpu.memory_space<vmem>>, vector<2x8x32xf32>
      %c0_102 = arith.constant 0 : index
      %c0_103 = arith.constant 0 : index
      %c0_104 = arith.constant 0 : index
      %224 = vector.load %arg21[%c0_102, %c0_103, %c0_104] : memref<2x8x32xf32, #tpu.memory_space<vmem>>, vector<2x8x32xf32>
      tpu.vector_store %arg21[%c0_102, %c0_103, %c0_104], %223 {strides = array<i32>} : memref<2x8x32xf32, #tpu.memory_space<vmem>>, vector<2x8x32xf32>,
    } else {
    }
    %c0 = arith.constant 0 : index
    %c0_1 = arith.constant 0 : index
    %c0_2 = arith.constant 0 : index
    %3 = vector.load %arg21[%c0, %c0_1, %c0_2] : memref<2x8x32xf32, #tpu.memory_space<vmem>>, vector<2x8x32xf32>
    %4 = vector.shape_cast %3 : vector<2x8x32xf32> to vector<16x32xf32>
    %5 = arith.truncf %4 : vector<16x32xf32> to vector<16x32xbf16>
    %c0_3 = arith.constant 0 : index
    %c0_4 = arith.constant 0 : index
    %c0_5 = arith.constant 0 : index
    %6 = vector.load %arg3[%c0_3, %c0_4, %c0_5] : memref<1x32x32xbf16, #tpu.memory_space<vmem>>, vector<1x32x32xbf16>
    %7 = vector.shape_cast %6 : vector<1x32x32xbf16> to vector<32x32xbf16>
    %c0_6 = arith.constant 0 : index
    %c0_7 = arith.constant 0 : index
    %c0_8 = arith.constant 0 : index
    %8 = vector.load %arg4[%c0_6, %c0_7, %c0_8] : memref<1x32x32xbf16, #tpu.memory_space<vmem>>, vector<1x32x32xbf16>
    %9 = vector.shape_cast %8 : vector<1x32x32xbf16> to vector<32x32xbf16>
    %c0_9 = arith.constant 0 : index
    %c0_10 = arith.constant 0 : index
    %c0_11 = arith.constant 0 : index
    %10 = vector.load %arg5[%c0_9, %c0_10, %c0_11] : memref<1x32x32xbf16, #tpu.memory_space<vmem>>, vector<1x32x32xbf16>
    %11 = vector.shape_cast %10 : vector<1x32x32xbf16> to vector<32x32xbf16>
    %c0_12 = arith.constant 0 : index
    %c0_13 = arith.constant 0 : index
    %c0_14 = arith.constant 0 : index
    %12 = vector.load %arg6[%c0_12, %c0_13, %c0_14] : memref<1x32x32xbf16, #tpu.memory_space<vmem>>, vector<1x32x32xbf16>
    %13 = vector.shape_cast %12 : vector<1x32x32xbf16> to vector<32x32xbf16>
    %c0_15 = arith.constant 0 : index
    %c0_16 = arith.constant 0 : index
    %c0_17 = arith.constant 0 : index
    %14 = vector.load %arg7[%c0_15, %c0_16, %c0_17] : memref<1x1x32xf32, #tpu.memory_space<vmem>>, vector<1x1x32xf32>
    %15 = vector.shape_cast %14 : vector<1x1x32xf32> to vector<1x32xf32>
    %c0_18 = arith.constant 0 : index
    %c0_19 = arith.constant 0 : index
    %c0_20 = arith.constant 0 : index
    %16 = vector.load %arg8[%c0_18, %c0_19, %c0_20] : memref<1x1x32xf32, #tpu.memory_space<vmem>>, vector<1x1x32xf32>
    %17 = vector.shape_cast %16 : vector<1x1x32xf32> to vector<1x32xf32>
    %c0_21 = arith.constant 0 : index
    %c0_22 = arith.constant 0 : index
    %c0_23 = arith.constant 0 : index
    %18 = vector.load %arg9[%c0_21, %c0_22, %c0_23] : memref<1x1x32xf32, #tpu.memory_space<vmem>>, vector<1x1x32xf32>
    %19 = vector.shape_cast %18 : vector<1x1x32xf32> to vector<1x32xf32>
    %c0_24 = arith.constant 0 : index
    %c0_25 = arith.constant 0 : index
    %c0_26 = arith.constant 0 : index
    %20 = vector.load %arg10[%c0_24, %c0_25, %c0_26] : memref<1x1x32xf32, #tpu.memory_space<vmem>>, vector<1x1x32xf32>
    %21 = vector.shape_cast %20 : vector<1x1x32xf32> to vector<1x32xf32>
    %cst = arith.constant dense<0.000000e+00> : vector<16x32xf32>
    %22 = tpu.matmul %5, %7, %cst {dimension_numbers = #tpu.dot_dimension_numbers<[1], [0], [0], [1], [0, 0, 1, 1], [], []>} : vector<16x32xbf16>, vector<32x32xbf16>, vector<16x32xf32> -> vector<16x32xf32>
    %23 = vector.broadcast %15 : vector<1x32xf32> to vector<16x32xf32>
    %24 = arith.addf %22, %23 : vector<16x32xf32>
    %cst_27 = arith.constant 0.353553385 : f32
    %25 = vector.broadcast %cst_27 : f32 to vector<16x32xf32>
    %26 = arith.mulf %24, %25 : vector<16x32xf32>
    %cst_28 = arith.constant dense<0.000000e+00> : vector<16x32xf32>
    %27 = tpu.matmul %5, %9, %cst_28 {dimension_numbers = #tpu.dot_dimension_numbers<[1], [0], [0], [1], [0, 0, 1, 1], [], []>} : vector<16x32xbf16>, vector<32x32xbf16>, vector<16x32xf32> -> vector<16x32xf32>
    %28 = vector.broadcast %17 : vector<1x32xf32> to vector<16x32xf32>
    %29 = arith.addf %27, %28 : vector<16x32xf32>
    %cst_29 = arith.constant dense<0.000000e+00> : vector<16x32xf32>
    %30 = tpu.matmul %5, %11, %cst_29 {dimension_numbers = #tpu.dot_dimension_numbers<[1], [0], [0], [1], [0, 0, 1, 1], [], []>} : vector<16x32xbf16>, vector<32x32xbf16>, vector<16x32xf32> -> vector<16x32xf32>
    %31 = vector.broadcast %19 : vector<1x32xf32> to vector<16x32xf32>
    %32 = arith.addf %30, %31 : vector<16x32xf32>
    %33 = vector.shape_cast %26 : vector<16x32xf32> to vector<2x8x32xf32>
    %34 = arith.truncf %33 : vector<2x8x32xf32> to vector<2x8x32xbf16>
    %35 = vector.shape_cast %29 : vector<16x32xf32> to vector<2x8x32xf32>
    %36 = arith.truncf %35 : vector<2x8x32xf32> to vector<2x8x32xbf16>
    %37 = vector.shape_cast %32 : vector<16x32xf32> to vector<2x8x32xf32>
    %38 = arith.truncf %37 : vector<2x8x32xf32> to vector<2x8x32xbf16>
    %39 = tpu.iota {dimensions = array<i32: 2>} : vector<2x1x8xi32>
    %c0_30 = arith.constant 0 : index
    %c0_31 = arith.constant 0 : index
    %c0_32 = arith.constant 0 : index
    %40 = vector.load %arg2[%c0_30, %c0_31, %c0_32] : memref<2x1x1xi32, #tpu.memory_space<vmem>>, vector<2x1x1xi32>
    %41 = vector.broadcast %40 : vector<2x1x1xi32> to vector<2x1x8xi32>
    %42 = arith.cmpi sge, %39, %41 : vector<2x1x8xi32>
    %cst_33 = arith.constant 0.000000e+00 : f32
    %43 = vector.broadcast %cst_33 : f32 to vector<16x32xf32>
    %44 = vector.broadcast %21 : vector<1x32xf32> to vector<16x32xf32>
    %45 = arith.addf %43, %44 : vector<16x32xf32>
    %46 = vector.extract_strided_slice %34 {offsets = [0, 0, 0], sizes = [2, 8, 8], strides = [1, 1, 1]} : vector<2x8x32xbf16> to vector<2x8x8xbf16>
    %47 = vector.extract_strided_slice %36 {offsets = [0, 0, 0], sizes = [2, 8, 8], strides = [1, 1, 1]} : vector<2x8x32xbf16> to vector<2x8x8xbf16>
    %48 = vector.extract_strided_slice %38 {offsets = [0, 0, 0], sizes = [2, 8, 8], strides = [1, 1, 1]} : vector<2x8x32xbf16> to vector<2x8x8xbf16>
    "tpu.trace_start"() <{level = 10 : i32, message = "bqd,bkd->bqk"}> : () -> ()
    %cst_34 = arith.constant dense<0.000000e+00> : vector<2x8x8xf32>
    %49 = tpu.matmul %46, %47, %cst_34 {dimension_numbers = #tpu.dot_dimension_numbers<[2], [2], [1], [1], [0, 0, 0, 1, 1, 1], [0], [0]>} : vector<2x8x8xbf16>, vector<2x8x8xbf16>, vector<2x8x8xf32> -> vector<2x8x8xf32>
    %cst_35 = arith.constant -1.000000e+30 : f32
    "tpu.trace_stop"() : () -> ()
    %50 = vector.shape_cast %42 : vector<2x1x8xi1> to vector<2x1x8xi1>
    %51 = vector.broadcast %50 : vector<2x1x8xi1> to vector<2x8x8xi1>
    %52 = vector.broadcast %cst_35 : f32 to vector<2x8x8xf32>
    %53 = arith.select %51, %52, %49 : vector<2x8x8xi1>, vector<2x8x8xf32>
    %cst_36 = arith.constant dense<0xFF800000> : vector<2x8xf32>
    %54 = vector.multi_reduction <maximumf>, %53, %cst_36 [2] : vector<2x8x8xf32> to vector<2x8xf32>
    %55 = vector.shape_cast %54 : vector<2x8xf32> to vector<2x8x1xf32>
    %56 = vector.broadcast %55 : vector<2x8x1xf32> to vector<2x8x8xf32>
    %57 = arith.subf %53, %56 : vector<2x8x8xf32>
    %58 = math.exp %57 : vector<2x8x8xf32>
    %cst_37 = arith.constant dense<0.000000e+00> : vector<2x8xf32>
    %59 = vector.multi_reduction <add>, %58, %cst_37 [2] : vector<2x8x8xf32> to vector<2x8xf32>
    %60 = vector.shape_cast %59 : vector<2x8xf32> to vector<2x8x1xf32>
    %61 = tpu.reciprocal %60 {approx = true} : vector<2x8x1xf32> -> vector<2x8x1xf32>
    %62 = vector.broadcast %61 : vector<2x8x1xf32> to vector<2x8x8xf32>
    %63 = arith.mulf %58, %62 : vector<2x8x8xf32>
    %64 = arith.truncf %63 : vector<2x8x8xf32> to vector<2x8x8xbf16>
    "tpu.trace_start"() <{level = 10 : i32, message = "bqk,bkd->bqd"}> : () -> ()
    %cst_38 = arith.constant dense<0.000000e+00> : vector<2x8x8xf32>
    %65 = tpu.matmul %64, %48, %cst_38 {dimension_numbers = #tpu.dot_dimension_numbers<[2], [1], [1], [2], [0, 0, 0, 1, 1, 2], [0], [0]>} : vector<2x8x8xbf16>, vector<2x8x8xbf16>, vector<2x8x8xf32> -> vector<2x8x8xf32>
    "tpu.trace_stop"() : () -> ()
    %66 = vector.shape_cast %65 : vector<2x8x8xf32> to vector<16x8xf32>
    %67 = arith.truncf %66 : vector<16x8xf32> to vector<16x8xbf16>
    %68 = vector.extract_strided_slice %13 {offsets = [0, 0], sizes = [8, 32], strides = [1, 1]} : vector<32x32xbf16> to vector<8x32xbf16>
    %cst_39 = arith.constant dense<0.000000e+00> : vector<16x32xf32>
    %69 = tpu.matmul %67, %68, %cst_39 {dimension_numbers = #tpu.dot_dimension_numbers<[1], [0], [0], [1], [0, 0, 1, 1], [], []>} : vector<16x8xbf16>, vector<8x32xbf16>, vector<16x32xf32> -> vector<16x32xf32>
    %70 = arith.addf %45, %69 : vector<16x32xf32>
    %71 = vector.extract_strided_slice %34 {offsets = [0, 0, 8], sizes = [2, 8, 8], strides = [1, 1, 1]} : vector<2x8x32xbf16> to vector<2x8x8xbf16>
    %72 = vector.extract_strided_slice %36 {offsets = [0, 0, 8], sizes = [2, 8, 8], strides = [1, 1, 1]} : vector<2x8x32xbf16> to vector<2x8x8xbf16>
    %73 = vector.extract_strided_slice %38 {offsets = [0, 0, 8], sizes = [2, 8, 8], strides = [1, 1, 1]} : vector<2x8x32xbf16> to vector<2x8x8xbf16>
    "tpu.trace_start"() <{level = 10 : i32, message = "bqd,bkd->bqk"}> : () -> ()
    %cst_40 = arith.constant dense<0.000000e+00> : vector<2x8x8xf32>
    %74 = tpu.matmul %71, %72, %cst_40 {dimension_numbers = #tpu.dot_dimension_numbers<[2], [2], [1], [1], [0, 0, 0, 1, 1, 1], [0], [0]>} : vector<2x8x8xbf16>, vector<2x8x8xbf16>, vector<2x8x8xf32> -> vector<2x8x8xf32>
    %cst_41 = arith.constant -1.000000e+30 : f32
    "tpu.trace_stop"() : () -> ()
    %75 = vector.shape_cast %42 : vector<2x1x8xi1> to vector<2x1x8xi1>
    %76 = vector.broadcast %75 : vector<2x1x8xi1> to vector<2x8x8xi1>
    %77 = vector.broadcast %cst_41 : f32 to vector<2x8x8xf32>
    %78 = arith.select %76, %77, %74 : vector<2x8x8xi1>, vector<2x8x8xf32>
    %cst_42 = arith.constant dense<0xFF800000> : vector<2x8xf32>
    %79 = vector.multi_reduction <maximumf>, %78, %cst_42 [2] : vector<2x8x8xf32> to vector<2x8xf32>
    %80 = vector.shape_cast %79 : vector<2x8xf32> to vector<2x8x1xf32>
    %81 = vector.broadcast %80 : vector<2x8x1xf32> to vector<2x8x8xf32>
    %82 = arith.subf %78, %81 : vector<2x8x8xf32>
    %83 = math.exp %82 : vector<2x8x8xf32>
    %cst_43 = arith.constant dense<0.000000e+00> : vector<2x8xf32>
    %84 = vector.multi_reduction <add>, %83, %cst_43 [2] : vector<2x8x8xf32> to vector<2x8xf32>
    %85 = vector.shape_cast %84 : vector<2x8xf32> to vector<2x8x1xf32>
    %86 = tpu.reciprocal %85 {approx = true} : vector<2x8x1xf32> -> vector<2x8x1xf32>
    %87 = vector.broadcast %86 : vector<2x8x1xf32> to vector<2x8x8xf32>
    %88 = arith.mulf %83, %87 : vector<2x8x8xf32>
    %89 = arith.truncf %88 : vector<2x8x8xf32> to vector<2x8x8xbf16>
    "tpu.trace_start"() <{level = 10 : i32, message = "bqk,bkd->bqd"}> : () -> ()
    %cst_44 = arith.constant dense<0.000000e+00> : vector<2x8x8xf32>
    %90 = tpu.matmul %89, %73, %cst_44 {dimension_numbers = #tpu.dot_dimension_numbers<[2], [1], [1], [2], [0, 0, 0, 1, 1, 2], [0], [0]>} : vector<2x8x8xbf16>, vector<2x8x8xbf16>, vector<2x8x8xf32> -> vector<2x8x8xf32>
    "tpu.trace_stop"() : () -> ()
    %91 = vector.shape_cast %90 : vector<2x8x8xf32> to vector<16x8xf32>
    %92 = arith.truncf %91 : vector<16x8xf32> to vector<16x8xbf16>
    %93 = vector.extract_strided_slice %13 {offsets = [8, 0], sizes = [8, 32], strides = [1, 1]} : vector<32x32xbf16> to vector<8x32xbf16>
    %cst_45 = arith.constant dense<0.000000e+00> : vector<16x32xf32>
    %94 = tpu.matmul %92, %93, %cst_45 {dimension_numbers = #tpu.dot_dimension_numbers<[1], [0], [0], [1], [0, 0, 1, 1], [], []>} : vector<16x8xbf16>, vector<8x32xbf16>, vector<16x32xf32> -> vector<16x32xf32>
    %95 = arith.addf %70, %94 : vector<16x32xf32>
    %96 = vector.extract_strided_slice %34 {offsets = [0, 0, 16], sizes = [2, 8, 8], strides = [1, 1, 1]} : vector<2x8x32xbf16> to vector<2x8x8xbf16>
    %97 = vector.extract_strided_slice %36 {offsets = [0, 0, 16], sizes = [2, 8, 8], strides = [1, 1, 1]} : vector<2x8x32xbf16> to vector<2x8x8xbf16>
    %98 = vector.extract_strided_slice %38 {offsets = [0, 0, 16], sizes = [2, 8, 8], strides = [1, 1, 1]} : vector<2x8x32xbf16> to vector<2x8x8xbf16>
    "tpu.trace_start"() <{level = 10 : i32, message = "bqd,bkd->bqk"}> : () -> ()
    %cst_46 = arith.constant dense<0.000000e+00> : vector<2x8x8xf32>
    %99 = tpu.matmul %96, %97, %cst_46 {dimension_numbers = #tpu.dot_dimension_numbers<[2], [2], [1], [1], [0, 0, 0, 1, 1, 1], [0], [0]>} : vector<2x8x8xbf16>, vector<2x8x8xbf16>, vector<2x8x8xf32> -> vector<2x8x8xf32>
    %cst_47 = arith.constant -1.000000e+30 : f32
    "tpu.trace_stop"() : () -> ()
    %100 = vector.shape_cast %42 : vector<2x1x8xi1> to vector<2x1x8xi1>
    %101 = vector.broadcast %100 : vector<2x1x8xi1> to vector<2x8x8xi1>
    %102 = vector.broadcast %cst_47 : f32 to vector<2x8x8xf32>
    %103 = arith.select %101, %102, %99 : vector<2x8x8xi1>, vector<2x8x8xf32>
    %cst_48 = arith.constant dense<0xFF800000> : vector<2x8xf32>
    %104 = vector.multi_reduction <maximumf>, %103, %cst_48 [2] : vector<2x8x8xf32> to vector<2x8xf32>
    %105 = vector.shape_cast %104 : vector<2x8xf32> to vector<2x8x1xf32>
    %106 = vector.broadcast %105 : vector<2x8x1xf32> to vector<2x8x8xf32>
    %107 = arith.subf %103, %106 : vector<2x8x8xf32>
    %108 = math.exp %107 : vector<2x8x8xf32>
    %cst_49 = arith.constant dense<0.000000e+00> : vector<2x8xf32>
    %109 = vector.multi_reduction <add>, %108, %cst_49 [2] : vector<2x8x8xf32> to vector<2x8xf32>
    %110 = vector.shape_cast %109 : vector<2x8xf32> to vector<2x8x1xf32>
    %111 = tpu.reciprocal %110 {approx = true} : vector<2x8x1xf32> -> vector<2x8x1xf32>
    %112 = vector.broadcast %111 : vector<2x8x1xf32> to vector<2x8x8xf32>
    %113 = arith.mulf %108, %112 : vector<2x8x8xf32>
    %114 = arith.truncf %113 : vector<2x8x8xf32> to vector<2x8x8xbf16>
    "tpu.trace_start"() <{level = 10 : i32, message = "bqk,bkd->bqd"}> : () -> ()
    %cst_50 = arith.constant dense<0.000000e+00> : vector<2x8x8xf32>
    %115 = tpu.matmul %114, %98, %cst_50 {dimension_numbers = #tpu.dot_dimension_numbers<[2], [1], [1], [2], [0, 0, 0, 1, 1, 2], [0], [0]>} : vector<2x8x8xbf16>, vector<2x8x8xbf16>, vector<2x8x8xf32> -> vector<2x8x8xf32>
    "tpu.trace_stop"() : () -> ()
    %116 = vector.shape_cast %115 : vector<2x8x8xf32> to vector<16x8xf32>
    %117 = arith.truncf %116 : vector<16x8xf32> to vector<16x8xbf16>
    %118 = vector.extract_strided_slice %13 {offsets = [16, 0], sizes = [8, 32], strides = [1, 1]} : vector<32x32xbf16> to vector<8x32xbf16>
    %cst_51 = arith.constant dense<0.000000e+00> : vector<16x32xf32>
    %119 = tpu.matmul %117, %118, %cst_51 {dimension_numbers = #tpu.dot_dimension_numbers<[1], [0], [0], [1], [0, 0, 1, 1], [], []>} : vector<16x8xbf16>, vector<8x32xbf16>, vector<16x32xf32> -> vector<16x32xf32>
    %120 = arith.addf %95, %119 : vector<16x32xf32>
    %121 = vector.extract_strided_slice %34 {offsets = [0, 0, 24], sizes = [2, 8, 8], strides = [1, 1, 1]} : vector<2x8x32xbf16> to vector<2x8x8xbf16>
    %122 = vector.extract_strided_slice %36 {offsets = [0, 0, 24], sizes = [2, 8, 8], strides = [1, 1, 1]} : vector<2x8x32xbf16> to vector<2x8x8xbf16>
    %123 = vector.extract_strided_slice %38 {offsets = [0, 0, 24], sizes = [2, 8, 8], strides = [1, 1, 1]} : vector<2x8x32xbf16> to vector<2x8x8xbf16>
    "tpu.trace_start"() <{level = 10 : i32, message = "bqd,bkd->bqk"}> : () -> ()
    %cst_52 = arith.constant dense<0.000000e+00> : vector<2x8x8xf32>
    %124 = tpu.matmul %121, %122, %cst_52 {dimension_numbers = #tpu.dot_dimension_numbers<[2], [2], [1], [1], [0, 0, 0, 1, 1, 1], [0], [0]>} : vector<2x8x8xbf16>, vector<2x8x8xbf16>, vector<2x8x8xf32> -> vector<2x8x8xf32>
    %cst_53 = arith.constant -1.000000e+30 : f32
    "tpu.trace_stop"() : () -> ()
    %125 = vector.shape_cast %42 : vector<2x1x8xi1> to vector<2x1x8xi1>
    %126 = vector.broadcast %125 : vector<2x1x8xi1> to vector<2x8x8xi1>
    %127 = vector.broadcast %cst_53 : f32 to vector<2x8x8xf32>
    %128 = arith.select %126, %127, %124 : vector<2x8x8xi1>, vector<2x8x8xf32>
    %cst_54 = arith.constant dense<0xFF800000> : vector<2x8xf32>
    %129 = vector.multi_reduction <maximumf>, %128, %cst_54 [2] : vector<2x8x8xf32> to vector<2x8xf32>
    %130 = vector.shape_cast %129 : vector<2x8xf32> to vector<2x8x1xf32>
    %131 = vector.broadcast %130 : vector<2x8x1xf32> to vector<2x8x8xf32>
    %132 = arith.subf %128, %131 : vector<2x8x8xf32>
    %133 = math.exp %132 : vector<2x8x8xf32>
    %cst_55 = arith.constant dense<0.000000e+00> : vector<2x8xf32>
    %134 = vector.multi_reduction <add>, %133, %cst_55 [2] : vector<2x8x8xf32> to vector<2x8xf32>
    %135 = vector.shape_cast %134 : vector<2x8xf32> to vector<2x8x1xf32>
    %136 = tpu.reciprocal %135 {approx = true} : vector<2x8x1xf32> -> vector<2x8x1xf32>
    %137 = vector.broadcast %136 : vector<2x8x1xf32> to vector<2x8x8xf32>
    %138 = arith.mulf %133, %137 : vector<2x8x8xf32>
    %139 = arith.truncf %138 : vector<2x8x8xf32> to vector<2x8x8xbf16>
    "tpu.trace_start"() <{level = 10 : i32, message = "bqk,bkd->bqd"}> : () -> ()
    %cst_56 = arith.constant dense<0.000000e+00> : vector<2x8x8xf32>
    %140 = tpu.matmul %139, %123, %cst_56 {dimension_numbers = #tpu.dot_dimension_numbers<[2], [1], [1], [2], [0, 0, 0, 1, 1, 2], [0], [0]>} : vector<2x8x8xbf16>, vector<2x8x8xbf16>, vector<2x8x8xf32> -> vector<2x8x8xf32>
    "tpu.trace_stop"() : () -> ()
    %141 = vector.shape_cast %140 : vector<2x8x8xf32> to vector<16x8xf32>
    %142 = arith.truncf %141 : vector<16x8xf32> to vector<16x8xbf16>
    %143 = vector.extract_strided_slice %13 {offsets = [24, 0], sizes = [8, 32], strides = [1, 1]} : vector<32x32xbf16> to vector<8x32xbf16>
    %cst_57 = arith.constant dense<0.000000e+00> : vector<16x32xf32>
    %144 = tpu.matmul %142, %143, %cst_57 {dimension_numbers = #tpu.dot_dimension_numbers<[1], [0], [0], [1], [0, 0, 1, 1], [], []>} : vector<16x8xbf16>, vector<8x32xbf16>, vector<16x32xf32> -> vector<16x32xf32>
    %145 = arith.addf %120, %144 : vector<16x32xf32>
    %146 = arith.addf %4, %145 : vector<16x32xf32>
    %c0_58 = arith.constant 0 : index
    %c0_59 = arith.constant 0 : index
    %c0_60 = arith.constant 0 : index
    %147 = vector.load %arg15[%c0_58, %c0_59, %c0_60] : memref<1x1x32xf32, #tpu.memory_space<vmem>>, vector<1x1x32xf32>
    %148 = vector.shape_cast %147 : vector<1x1x32xf32> to vector<1x32xf32>
    %c0_61 = arith.constant 0 : index
    %c0_62 = arith.constant 0 : index
    %c0_63 = arith.constant 0 : index
    %149 = vector.load %arg16[%c0_61, %c0_62, %c0_63] : memref<1x1x32xf32, #tpu.memory_space<vmem>>, vector<1x1x32xf32>
    %150 = vector.shape_cast %149 : vector<1x1x32xf32> to vector<1x32xf32>
    %cst_64 = arith.constant dense<0.000000e+00> : vector<16xf32>
    %151 = vector.multi_reduction <add>, %146, %cst_64 [1] : vector<16x32xf32> to vector<16xf32>
    %152 = vector.shape_cast %151 : vector<16xf32> to vector<16x1xf32>
    %cst_65 = arith.constant 3.200000e+01 : f32
    %153 = vector.broadcast %cst_65 : f32 to vector<16x1xf32>
    %154 = arith.divf %152, %153 : vector<16x1xf32>
    %155 = vector.broadcast %154 : vector<16x1xf32> to vector<16x32xf32>
    %156 = arith.subf %146, %155 : vector<16x32xf32>
    %157 = arith.mulf %156, %156 : vector<16x32xf32>
    %cst_66 = arith.constant dense<0.000000e+00> : vector<16xf32>
    %158 = vector.multi_reduction <add>, %157, %cst_66 [1] : vector<16x32xf32> to vector<16xf32>
    %159 = vector.shape_cast %158 : vector<16xf32> to vector<16x1xf32>
    %cst_67 = arith.constant 3.200000e+01 : f32
    %160 = vector.broadcast %cst_67 : f32 to vector<16x1xf32>
    %161 = arith.divf %159, %160 : vector<16x1xf32>
    %162 = vector.broadcast %154 : vector<16x1xf32> to vector<16x32xf32>
    %163 = arith.subf %146, %162 : vector<16x32xf32>
    %cst_68 = arith.constant 9.99999974E-6 : f32
    %164 = vector.broadcast %cst_68 : f32 to vector<16x1xf32>
    %165 = arith.addf %161, %164 : vector<16x1xf32>
    %166 = math.rsqrt %165 : vector<16x1xf32>
    %167 = vector.broadcast %166 : vector<16x1xf32> to vector<16x32xf32>
    %168 = arith.mulf %163, %167 : vector<16x32xf32>
    %169 = vector.broadcast %148 : vector<1x32xf32> to vector<16x32xf32>
    %170 = arith.mulf %168, %169 : vector<16x32xf32>
    %171 = vector.broadcast %150 : vector<1x32xf32> to vector<16x32xf32>
    %172 = arith.addf %170, %171 : vector<16x32xf32>
    %173 = arith.truncf %172 : vector<16x32xf32> to vector<16x32xbf16>
    %c0_69 = arith.constant 0 : index
    %c0_70 = arith.constant 0 : index
    %c0_71 = arith.constant 0 : index
    %174 = vector.load %arg11[%c0_69, %c0_70, %c0_71] : memref<1x32x64xbf16, #tpu.memory_space<vmem>>, vector<1x32x64xbf16>
    %175 = vector.shape_cast %174 : vector<1x32x64xbf16> to vector<32x64xbf16>
    %cst_72 = arith.constant dense<0.000000e+00> : vector<16x64xf32>
    %176 = tpu.matmul %173, %175, %cst_72 {dimension_numbers = #tpu.dot_dimension_numbers<[1], [0], [0], [1], [0, 0, 1, 1], [], []>} : vector<16x32xbf16>, vector<32x64xbf16>, vector<16x64xf32> -> vector<16x64xf32>
    %c0_73 = arith.constant 0 : index
    %c0_74 = arith.constant 0 : index
    %c0_75 = arith.constant 0 : index
    %177 = vector.load %arg12[%c0_73, %c0_74, %c0_75] : memref<1x1x64xf32, #tpu.memory_space<vmem>>, vector<1x1x64xf32>
    %178 = vector.shape_cast %177 : vector<1x1x64xf32> to vector<1x64xf32>
    %179 = vector.broadcast %178 : vector<1x64xf32> to vector<16x64xf32>
    %180 = arith.addf %176, %179 : vector<16x64xf32>
    %cst_76 = arith.constant 0.000000e+00 : f32
    %181 = vector.broadcast %cst_76 : f32 to vector<16x64xf32>
    %182 = arith.maximumf %180, %181 : vector<16x64xf32>
    %183 = arith.truncf %182 : vector<16x64xf32> to vector<16x64xbf16>
    %c0_77 = arith.constant 0 : index
    %c0_78 = arith.constant 0 : index
    %c0_79 = arith.constant 0 : index
    %184 = vector.load %arg13[%c0_77, %c0_78, %c0_79] : memref<1x64x32xbf16, #tpu.memory_space<vmem>>, vector<1x64x32xbf16>
    %185 = vector.shape_cast %184 : vector<1x64x32xbf16> to vector<64x32xbf16>
    %cst_80 = arith.constant dense<0.000000e+00> : vector<16x32xf32>
    %186 = tpu.matmul %183, %185, %cst_80 {dimension_numbers = #tpu.dot_dimension_numbers<[1], [0], [0], [1], [0, 0, 1, 1], [], []>} : vector<16x64xbf16>, vector<64x32xbf16>, vector<16x32xf32> -> vector<16x32xf32>
    %c0_81 = arith.constant 0 : index
    %c0_82 = arith.constant 0 : index
    %c0_83 = arith.constant 0 : index
    %187 = vector.load %arg14[%c0_81, %c0_82, %c0_83] : memref<1x1x32xf32, #tpu.memory_space<vmem>>, vector<1x1x32xf32>
    %188 = vector.shape_cast %187 : vector<1x1x32xf32> to vector<1x32xf32>
    %189 = vector.broadcast %188 : vector<1x32xf32> to vector<16x32xf32>
    %190 = arith.addf %186, %189 : vector<16x32xf32>
    %191 = arith.addf %172, %190 : vector<16x32xf32>
    %c0_84 = arith.constant 0 : index
    %c0_85 = arith.constant 0 : index
    %c0_86 = arith.constant 0 : index
    %192 = vector.load %arg17[%c0_84, %c0_85, %c0_86] : memref<1x1x32xf32, #tpu.memory_space<vmem>>, vector<1x1x32xf32>
    %193 = vector.shape_cast %192 : vector<1x1x32xf32> to vector<1x32xf32>
    %c0_87 = arith.constant 0 : index
    %c0_88 = arith.constant 0 : index
    %c0_89 = arith.constant 0 : index
    %194 = vector.load %arg18[%c0_87, %c0_88, %c0_89] : memref<1x1x32xf32, #tpu.memory_space<vmem>>, vector<1x1x32xf32>
    %195 = vector.shape_cast %194 : vector<1x1x32xf32> to vector<1x32xf32>
    %cst_90 = arith.constant dense<0.000000e+00> : vector<16xf32>
    %196 = vector.multi_reduction <add>, %191, %cst_90 [1] : vector<16x32xf32> to vector<16xf32>
    %197 = vector.shape_cast %196 : vector<16xf32> to vector<16x1xf32>
    %cst_91 = arith.constant 3.200000e+01 : f32
    %198 = vector.broadcast %cst_91 : f32 to vector<16x1xf32>
    %199 = arith.divf %197, %198 : vector<16x1xf32>
    %200 = vector.broadcast %199 : vector<16x1xf32> to vector<16x32xf32>
    %201 = arith.subf %191, %200 : vector<16x32xf32>
    %202 = arith.mulf %201, %201 : vector<16x32xf32>
    %cst_92 = arith.constant dense<0.000000e+00> : vector<16xf32>
    %203 = vector.multi_reduction <add>, %202, %cst_92 [1] : vector<16x32xf32> to vector<16xf32>
    %204 = vector.shape_cast %203 : vector<16xf32> to vector<16x1xf32>
    %cst_93 = arith.constant 3.200000e+01 : f32
    %205 = vector.broadcast %cst_93 : f32 to vector<16x1xf32>
    %206 = arith.divf %204, %205 : vector<16x1xf32>
    %207 = vector.broadcast %199 : vector<16x1xf32> to vector<16x32xf32>
    %208 = arith.subf %191, %207 : vector<16x32xf32>
    %cst_94 = arith.constant 9.99999974E-6 : f32
    %209 = vector.broadcast %cst_94 : f32 to vector<16x1xf32>
    %210 = arith.addf %206, %209 : vector<16x1xf32>
    %211 = math.rsqrt %210 : vector<16x1xf32>
    %212 = vector.broadcast %211 : vector<16x1xf32> to vector<16x32xf32>
    %213 = arith.mulf %208, %212 : vector<16x32xf32>
    %214 = vector.broadcast %193 : vector<1x32xf32> to vector<16x32xf32>
    %215 = arith.mulf %213, %214 : vector<16x32xf32>
    %216 = vector.broadcast %195 : vector<1x32xf32> to vector<16x32xf32>
    %217 = arith.addf %215, %216 : vector<16x32xf32>
    %218 = vector.shape_cast %217 : vector<16x32xf32> to vector<2x8x32xf32>
    %c0_95 = arith.constant 0 : index
    %c0_96 = arith.constant 0 : index
    %c0_97 = arith.constant 0 : index
    %219 = vector.load %arg21[%c0_95, %c0_96, %c0_97] : memref<2x8x32xf32, #tpu.memory_space<vmem>>, vector<2x8x32xf32>
    tpu.vector_store %arg21[%c0_95, %c0_96, %c0_97], %218 {strides = array<i32>} : memref<2x8x32xf32, #tpu.memory_space<vmem>>, vector<2x8x32xf32>,
    %c1_i32 = arith.constant 1 : i32
    %220 = arith.cmpi eq, %arg0, %c1_i32 : i32
    %221 = arith.extui %220 : i1 to i32
    %c0_i32_98 = arith.constant 0 : i32
    %222 = arith.cmpi ne, %221, %c0_i32_98 : i32
    scf.if %222 {
      %c0_99 = arith.constant 0 : index
      %c0_100 = arith.constant 0 : index
      %c0_101 = arith.constant 0 : index
      %223 = vector.load %arg21[%c0_99, %c0_100, %c0_101] : memref<2x8x32xf32, #tpu.memory_space<vmem>>, vector<2x8x32xf32>
      %224 = vector.shape_cast %223 : vector<2x8x32xf32> to vector<16x32xf32>
      %c0_102 = arith.constant 0 : index
      %c0_103 = arith.constant 0 : index
      %225 = vector.load %arg19[%c0_102, %c0_103] : memref<1x32xf32, #tpu.memory_space<vmem>>, vector<1x32xf32>
      %c0_104 = arith.constant 0 : index
      %c0_105 = arith.constant 0 : index
      %226 = vector.load %arg20[%c0_104, %c0_105] : memref<1x32xf32, #tpu.memory_space<vmem>>, vector<1x32xf32>
      %cst_106 = arith.constant dense<0.000000e+00> : vector<16xf32>
      %227 = vector.multi_reduction <add>, %224, %cst_106 [1] : vector<16x32xf32> to vector<16xf32>
      %228 = vector.shape_cast %227 : vector<16xf32> to vector<16x1xf32>
      %cst_107 = arith.constant 3.200000e+01 : f32
      %229 = vector.broadcast %cst_107 : f32 to vector<16x1xf32>
      %230 = arith.divf %228, %229 : vector<16x1xf32>
      %231 = vector.broadcast %230 : vector<16x1xf32> to vector<16x32xf32>
      %232 = arith.subf %224, %231 : vector<16x32xf32>
      %233 = arith.mulf %232, %232 : vector<16x32xf32>
      %cst_108 = arith.constant dense<0.000000e+00> : vector<16xf32>
      %234 = vector.multi_reduction <add>, %233, %cst_108 [1] : vector<16x32xf32> to vector<16xf32>
      %235 = vector.shape_cast %234 : vector<16xf32> to vector<16x1xf32>
      %cst_109 = arith.constant 3.200000e+01 : f32
      %236 = vector.broadcast %cst_109 : f32 to vector<16x1xf32>
      %237 = arith.divf %235, %236 : vector<16x1xf32>
      %238 = vector.broadcast %230 : vector<16x1xf32> to vector<16x32xf32>
      %239 = arith.subf %224, %238 : vector<16x32xf32>
      %cst_110 = arith.constant 9.99999974E-6 : f32
      %240 = vector.broadcast %cst_110 : f32 to vector<16x1xf32>
      %241 = arith.addf %237, %240 : vector<16x1xf32>
      %242 = math.rsqrt %241 : vector<16x1xf32>
      %243 = vector.broadcast %242 : vector<16x1xf32> to vector<16x32xf32>
      %244 = arith.mulf %239, %243 : vector<16x32xf32>
      %245 = vector.broadcast %225 : vector<1x32xf32> to vector<16x32xf32>
      %246 = arith.mulf %244, %245 : vector<16x32xf32>
      %247 = vector.broadcast %226 : vector<1x32xf32> to vector<16x32xf32>
      %248 = arith.addf %246, %247 : vector<16x32xf32>
      %249 = vector.shape_cast %248 : vector<16x32xf32> to vector<2x8x32xf32>
      %c0_111 = arith.constant 0 : index
      %c0_112 = arith.constant 0 : index
      %c0_113 = arith.constant 0 : index
      %250 = vector.load %arg21[%c0_111, %c0_112, %c0_113] : memref<2x8x32xf32, #tpu.memory_space<vmem>>, vector<2x8x32xf32>
      tpu.vector_store %arg21[%c0_111, %c0_112, %c0_113], %249 {strides = array<i32>} : memref<2x8x32xf32, #tpu.memory_space<vmem>>, vector<2x8x32xf32>,
    } else {
    }
    return
  }
  func.func @transform_0(%arg0: i32) -> (i32, i32, i32) {
    %c0_i32 = arith.constant 0 : i32
    %c0_i32_0 = arith.constant 0 : i32
    %c0_i32_1 = arith.constant 0 : i32
    %c0_i32_2 = arith.constant 0 : i32
    return %c0_i32, %c0_i32_0, %c0_i32_1 : i32, i32, i32
  }
  func.func @transform_1(%arg0: i32) -> (i32, i32, i32) {
    %c0_i32 = arith.constant 0 : i32
    %c0_i32_0 = arith.constant 0 : i32
    %c0_i32_1 = arith.constant 0 : i32
    %c0_i32_2 = arith.constant 0 : i32
    return %c0_i32, %c0_i32_0, %c0_i32_1 : i32, i32, i32
  }
  func.func @transform_2(%arg0: i32) -> (i32, i32, i32) {
    %c0_i32 = arith.constant 0 : i32
    %c0_i32_0 = arith.constant 0 : i32
    %c0_i32_1 = arith.constant 0 : i32
    return %arg0, %c0_i32, %c0_i32_0 : i32, i32, i32
  }
  func.func @transform_3(%arg0: i32) -> (i32, i32, i32) {
    %c0_i32 = arith.constant 0 : i32
    %c0_i32_0 = arith.constant 0 : i32
    %c0_i32_1 = arith.constant 0 : i32
    return %arg0, %c0_i32, %c0_i32_0 : i32, i32, i32
  }
  func.func @transform_4(%arg0: i32) -> (i32, i32, i32) {
    %c0_i32 = arith.constant 0 : i32
    %c0_i32_0 = arith.constant 0 : i32
    %c0_i32_1 = arith.constant 0 : i32
    return %arg0, %c0_i32, %c0_i32_0 : i32, i32, i32
  }
  func.func @transform_5(%arg0: i32) -> (i32, i32, i32) {
    %c0_i32 = arith.constant 0 : i32
    %c0_i32_0 = arith.constant 0 : i32
    %c0_i32_1 = arith.constant 0 : i32
    return %arg0, %c0_i32, %c0_i32_0 : i32, i32, i32
  }
  func.func @transform_6(%arg0: i32) -> (i32, i32, i32) {
    %c0_i32 = arith.constant 0 : i32
    %c0_i32_0 = arith.constant 0 : i32
    %c0_i32_1 = arith.constant 0 : i32
    return %arg0, %c0_i32, %c0_i32_0 : i32, i32, i32
  }
  func.func @transform_7(%arg0: i32) -> (i32, i32, i32) {
    %c0_i32 = arith.constant 0 : i32
    %c0_i32_0 = arith.constant 0 : i32
    %c0_i32_1 = arith.constant 0 : i32
    return %arg0, %c0_i32, %c0_i32_0 : i32, i32, i32
  }
  func.func @transform_8(%arg0: i32) -> (i32, i32, i32) {
    %c0_i32 = arith.constant 0 : i32
    %c0_i32_0 = arith.constant 0 : i32
    %c0_i32_1 = arith.constant 0 : i32
    return %arg0, %c0_i32, %c0_i32_0 : i32, i32, i32
  }
  func.func @transform_9(%arg0: i32) -> (i32, i32, i32) {
    %c0_i32 = arith.constant 0 : i32
    %c0_i32_0 = arith.constant 0 : i32
    %c0_i32_1 = arith.constant 0 : i32
    return %arg0, %c0_i32, %c0_i32_0 : i32, i32, i32
  }
  func.func @transform_10(%arg0: i32) -> (i32, i32, i32) {
    %c0_i32 = arith.constant 0 : i32
    %c0_i32_0 = arith.constant 0 : i32
    %c0_i32_1 = arith.constant 0 : i32
    return %arg0, %c0_i32, %c0_i32_0 : i32, i32, i32
  }
  func.func @transform_11(%arg0: i32) -> (i32, i32, i32) {
    %c0_i32 = arith.constant 0 : i32
    %c0_i32_0 = arith.constant 0 : i32
    %c0_i32_1 = arith.constant 0 : i32
    return %arg0, %c0_i32, %c0_i32_0 : i32, i32, i32
  }
  func.func @transform_12(%arg0: i32) -> (i32, i32, i32) {
    %c0_i32 = arith.constant 0 : i32
    %c0_i32_0 = arith.constant 0 : i32
    %c0_i32_1 = arith.constant 0 : i32
    return %arg0, %c0_i32, %c0_i32_0 : i32, i32, i32
  }
  func.func @transform_13(%arg0: i32) -> (i32, i32, i32) {
    %c0_i32 = arith.constant 0 : i32
    %c0_i32_0 = arith.constant 0 : i32
    %c0_i32_1 = arith.constant 0 : i32
    return %arg0, %c0_i32, %c0_i32_0 : i32, i32, i32
  }
  func.func @transform_14(%arg0: i32) -> (i32, i32, i32) {
    %c0_i32 = arith.constant 0 : i32
    %c0_i32_0 = arith.constant 0 : i32
    %c0_i32_1 = arith.constant 0 : i32
    return %arg0, %c0_i32, %c0_i32_0 : i32, i32, i32
  }
  func.func @transform_15(%arg0: i32) -> (i32, i32, i32) {
    %c0_i32 = arith.constant 0 : i32
    %c0_i32_0 = arith.constant 0 : i32
    %c0_i32_1 = arith.constant 0 : i32
    return %arg0, %c0_i32, %c0_i32_0 : i32, i32, i32
  }
  func.func @transform_16(%arg0: i32) -> (i32, i32, i32) {
    %c0_i32 = arith.constant 0 : i32
    %c0_i32_0 = arith.constant 0 : i32
    %c0_i32_1 = arith.constant 0 : i32
    return %arg0, %c0_i32, %c0_i32_0 : i32, i32, i32
  }
  func.func @transform_17(%arg0: i32) -> (i32, i32, i32) {
    %c0_i32 = arith.constant 0 : i32
    %c0_i32_0 = arith.constant 0 : i32
    %c0_i32_1 = arith.constant 0 : i32
    return %arg0, %c0_i32, %c0_i32_0 : i32, i32, i32
  }
  func.func @transform_18(%arg0: i32) -> (i32, i32) {
    %c0_i32 = arith.constant 0 : i32
    %c0_i32_0 = arith.constant 0 : i32
    %c0_i32_1 = arith.constant 0 : i32
    return %c0_i32, %c0_i32_0 : i32, i32
  }
  func.func @transform_19(%arg0: i32) -> (i32, i32) {
    %c0_i32 = arith.constant 0 : i32
    %c0_i32_0 = arith.constant 0 : i32
    %c0_i32_1 = arith.constant 0 : i32
    return %c0_i32, %c0_i32_0 : i32, i32
  }
  func.func @transform_20(%arg0: i32) -> (i32, i32, i32) {
    %c0_i32 = arith.constant 0 : i32
    %c0_i32_0 = arith.constant 0 : i32
    %c0_i32_1 = arith.constant 0 : i32
    %c0_i32_2 = arith.constant 0 : i32
    return %c0_i32, %c0_i32_0, %c0_i32_1 : i32, i32, i32
  }
}

</mosaic_0001>

<bundles_post_ra>
// kernel: tpu_custom_call.1
= control target key start
LH: loop header
LB: loop body
LE: loop exit
PB: predicated region body
PF: predicated region fallthrough
CT: control target
= control target key end

     0   :  { %s4093_s0 = inlined_call_operand.hbm [shape: f32[2,8,32], index: 0, kind: input, shape index: {}]   ;;  %s4094_s1 = inlined_call_operand.vmem [shape: s32[2,1,1], index: 1, kind: input, shape index: {}]   ;;  %s4095_s2 = inlined_call_operand.vmem [shape: bf16[2,32,32], index: 2, kind: input, shape index: {}]   ;;  %s4096_s3 = inlined_call_operand.vmem [shape: bf16[2,32,32], index: 3, kind: input, shape index: {}]   ;;  %s4097_s4 = inlined_call_operand.vmem [shape: bf16[2,32,32], index: 4, kind: input, shape index: {}]   ;;  %s4098_s5 = inlined_call_operand.hbm [shape: bf16[2,32,32], index: 5, kind: input, shape index: {}]   ;;  %s4099_s6 = inlined_call_operand.vmem [shape: f32[2,1,32], index: 6, kind: input, shape index: {}]   ;;  %s4100_s7 = inlined_call_operand.vmem [shape: f32[2,1,32], index: 7, kind: input, shape index: {}]   ;;  %s4101_s8 = inlined_call_operand.vmem [shape: f32[2,1,32], index: 8, kind: input, shape index: {}]   ;;  %s4102_s9 = inlined_call_operand.vmem [shape: f32[2,1,32], index: 9, kind: input, shape index: {}]   ;;  %s4103_s10 = inlined_call_operand.hbm [shape: bf16[2,32,64], index: 10, kind: input, shape index: {}]   ;;  %s4104_s11 = inlined_call_operand.vmem [shape: f32[2,1,64], index: 11, kind: input, shape index: {}]   ;;  %s4105_s12 = inlined_call_operand.vmem [shape: bf16[2,64,32], index: 12, kind: input, shape index: {}]   ;;  %s4106_s13 = inlined_call_operand.vmem [shape: f32[2,1,32], index: 13, kind: input, shape index: {}]   ;;  %s4107_s14 = inlined_call_operand.vmem [shape: f32[2,1,32], index: 14, kind: input, shape index: {}]   ;;  %s4108_s15 = inlined_call_operand.vmem [shape: f32[2,1,32], index: 15, kind: input, shape index: {}]   ;;  %s4109_s16 = inlined_call_operand.vmem [shape: f32[2,1,32], index: 16, kind: input, shape index: {}]   ;;  %s4110_s17 = inlined_call_operand.vmem [shape: f32[2,1,32], index: 17, kind: input, shape index: {}]   ;;  %s4111_s18 = inlined_call_operand.vmem [shape: f32[1,32], index: 18, kind: input, shape index: {}]   ;;  %s4112_s19 = inlined_call_operand.vmem [shape: f32[1,32], index: 19, kind: input, shape index: {}]   ;;  %s4113_s20 = inlined_call_operand.hbm [shape: f32[2,8,32], index: 20, kind: output, shape index: {}]  }
   0x1   :  { %4128 = sst [smem:[#allocation19_spill]] %s4093_s0 }
   0x2   :  { %4129 = sst [smem:[#allocation20_spill]] %s4094_s1 }
   0x3   :  { %4130 = sst [smem:[#allocation21_spill]] %s4095_s2 }
   0x4   :  { %4131 = sst [smem:[#allocation22_spill]] %s4096_s3 }
   0x5   :  { %4132 = sst [smem:[#allocation23_spill]] %s4097_s4 }
   0x6   :  { %4133 = sst [smem:[#allocation24_spill]] %s4098_s5 }
   0x7   :  { %4134 = sst [smem:[#allocation25_spill]] %s4099_s6 }
   0x8   :  { %4135 = sst [smem:[#allocation26_spill]] %s4103_s10 }
   0x9   :  { %4136 = sst [smem:[#allocation27_spill]] %s4105_s12 }
   0xa   :  { %4137 = sst [smem:[#allocation28_spill]] %s4111_s18 }
   0xb   :  { %4138 = sst [smem:[#allocation29_spill]] %s4112_s19 }
   0xc   :  { %4139 = sst [smem:[#allocation30_spill]] %s4113_s20 }
   0xd   :  { %25 = vsyncpa [#allocation3], 0 }
   0xe   :  { %26 = vsyncpa [#allocation6], 0 }
   0xf   :  { %28 = vsyncpa [#allocation6 + $0x1], 0 }
  0x10   :  { %29 = vsyncpa [#allocation4], 0  ;;  %s3482_s1 = smov 0   ;;  %s3484_s22 = smov 0  }
  0x11   :  { %s3486_s23 = smov 0   ;;  %s3488_s24 = smov 0  }
  0x12 LB: > { %4140 = sst [smem:[#allocation12_spill]] %s3351_s22  ;;  %s3503_s2 = sadd.s32 1, %s3359_s24   ;;  %s3359_s24 = sphi %s3488_s24, %s4182_s24   ;;  %s3355_s23 = sphi %s3486_s23, %s4185_s23   ;;  %s3351_s22 = sphi %s3484_s22, %s4184_s22   ;;  %s3347_s1 = sphi %s3482_s1, %s4183_s1  }
  0x13   : > { %4141 = sst [smem:[#allocation13_spill]] %s3355_s23  ;;  %s162_s25 = sadd.s32 1, %s3355_s23 }
  0x14   : > { %4142 = sst [smem:[#allocation14_spill]] %s3503_s2  ;;  %s159_s3 = ssub.s32 %s3359_s24, %s3503_s2 }
  0x15   : > { %p169_p0 = scmp.ne.s32.totalorder %s3355_s23, %s3351_s22  ;;  %p160_p1 = scmp.eq.s32.totalorder %s159_s3, 0 }
  0x16   : > { %p170_p2 = scmp.eq.s32.totalorder %s3359_s24, 0  ;;  %p3104_p3 = scmp.lt.s32.totalorder %s3359_s24, 2 }
  0x17   : > { %s3513_s26 = scalar_select %p160_p1, %s3355_s23, %s162_s25  }
  0x18   : > { %p171_p4 = por %p170_p2, %p169_p0  ;;  %s620_s27 = sand.u32 1, %s3359_s24  }
  0x19   : > { %4143 = sst [smem:[#allocation15_spill]] %s3513_s26  ;;  %s622_s28 = sand.u32 1, %s3355_s23  }
  0x1a   : > { %s3517_s4 = sshll.u32 %s622_s28, 4  ;;  %s4117_s29 = sshll.u32 %s3359_s24, 8 }
  0x1b   : > { %s4144_s5 = sld [smem:[#allocation24_spill]]  ;;  %s624_s3 = scalar_lea.vmem [#allocation5], %s3517_s4 }
  0x1c   : > { %s631_s2 = sshll.u32 %s624_s3, 4  ;;  %p3528_p5 = pnand %p3104_p3, %p171_p4  ;;  %s3532_s2 = int_to_ptr.vmem [resolvable:$true] %s631_s2 }
  0x1d   : > { %s3534_s28 = scalar_lea.sflag [#allocation6], %s620_s27 }
  0x1e   : > { %p3213_p7 = pneg %p3528_p5 }
  0x21   : > { %s3525_s21 = scalar_lea.hbm %s4144_s5, %s4117_s29  ;;  %s3216_s3 = scalar_lea.hbm %s4144_s5, 512 }
  0x22   : > { %s3211_s26 = scalar_lea.hbm %s3525_s21, 256  ;;  %p3217_p10 = scmp.lt.s32.totalorder %s3525_s21, %s4144_s5 }
  0x23   : > { %p3212_p6 = scmp.ne.s32.totalorder %s3525_s21, %s3211_s26  ;;  %p3218_p11 = scmp.lt.s32.totalorder %s3216_s3, %s3211_s26 }
  0x25   : > { %p3214_p8 = pnand %p3213_p7, %p3212_p6  ;;  %p3219_p12 = por %p3218_p11, %p3217_p10 }
  0x27   : > { %p3215_p9 = pneg %p3214_p8 }
  0x29   : > { %p3220_p13 = pnand %p3219_p12, %p3215_p9 }
  0x2b   : > { %3223 = shalt.err (!%p3220_p13)
}
  0x2c   : > { %s3224_s27 = scalar_lea.vmem %s3532_s2, 256  ;;  %s3361_s30 = smov [#allocation5]  }
  0x2d   : > { %p3225_p0 = scmp.ne.s32.totalorder %s3532_s2, %s3224_s27  ;;  %s3229_s0 = sshll.u32 %s3361_s30, 4  ;;  %s3230_s0 = int_to_ptr.vmem [resolvable:$false] %s3229_s0 }
  0x2e   : > { %s3231_s20 = scalar_lea.vmem %s3230_s0, 512  ;;  %p3232_p3 = scmp.lt.s32.totalorder %s3532_s2, %s3230_s0 }
  0x2f   : > { %p3227_p1 = pnand %p3225_p0, %p3213_p7  ;;  %p3233_p4 = scmp.lt.s32.totalorder %s3231_s20, %s3224_s27 }
  0x31   : > { %p3228_p2 = pneg %p3227_p1  ;;  %p3234_p6 = por %p3233_p4, %p3232_p3 }
  0x33   : > { %p3235_p8 = pnand %p3234_p6, %p3228_p2 }
  0x35   : > { %3238 = shalt.err (!%p3235_p8)
}
  0x36   : > { %s4119_s23 = smov 64   ;;  %s4120_s26 = smov 4  }
  0x37   : > { %3099 = dma.hbm_to_vmem [thread:$0]  (!%p3528_p5), %s3525_s21, 256, %s3532_s2, %s3534_s28, %s4119_s23, %s4119_s23, %s4120_s26  }
  0x38   : > { %s4146_s20 = sshll.u32 %s3359_s24, 8  ;;  %s4147_s10 = sld [smem:[#allocation26_spill]] }
  0x39   : > { %s669_s30 = scalar_lea.vmem [#allocation7], %s3517_s4  ;;  %s3575_s5 = sadd.s32 4294967295, %s3359_s24  }
  0x3a   : > { %s676_s0 = sshll.u32 %s669_s30, 4  ;;  %4148 = sst [smem:[#allocation16_spill]] %s3575_s5  ;;  %s3572_s0 = int_to_ptr.vmem [resolvable:$true] %s676_s0 }
  0x3b   : > { %p175_p9 = scmp.ne.s32.totalorder %s3351_s22, %s3347_s1  ;;  %p4121_p10 = scmp.eq.s32.totalorder %s3575_s5, 0 }
  0x3c   : > { %p2777_p11 = scmp.ge.s32.totalorder %s3359_s24, 1  ;;  %p561_p12 = scmp.lt.s32.totalorder %s3359_s24, 3 }
  0x3d   : > { %p3585_p0 = por %p4121_p10, %p175_p9  ;;  %s3364_s21 = smov [#allocation2]  }
  0x3e   : > { %s3569_s27 = scalar_lea.hbm %s4147_s10, %s4146_s20  ;;  %p3589_p1 = pnand %p2777_p11, %p561_p12 }
  0x3f   : > { %s4149_s2 = scalar_select %p3585_p0, 1, 0 }
  0x40   : > { %s573_s20 = sshll.u32 %s3364_s21, 4  ;;  %s3239_s1 = scalar_lea.hbm %s3569_s27, 256  ;;  %s3593_s20 = int_to_ptr.vmem [resolvable:$true] %s573_s20 }
  0x41   : > { %p3240_p3 = scmp.ne.s32.totalorder %s3569_s27, %s3239_s1  ;;  %s3244_s3 = scalar_lea.hbm %s4147_s10, 512 }
  0x42   : > { %p3245_p8 = scmp.lt.s32.totalorder %s3569_s27, %s4147_s10  ;;  %p3246_p9 = scmp.lt.s32.totalorder %s3244_s3, %s3239_s1 }
  0x43   : > { %p3242_p4 = pnand %p3240_p3, %p3213_p7 }
  0x44   : > { %p3247_p11 = por %p3246_p9, %p3245_p8 }
  0x45   : > { %p3243_p6 = pneg %p3242_p4 }
  0x47   : > { %p3248_p12 = pnand %p3247_p11, %p3243_p6 }
  0x49   : > { %3251 = shalt.err (!%p3248_p12)
}
  0x4a   : > { %s3252_s21 = scalar_lea.vmem %s3572_s0, 256  ;;  %s3365_s24 = smov [#allocation7]  }
  0x4b   : > { %p3253_p13 = scmp.ne.s32.totalorder %s3572_s0, %s3252_s21  ;;  %s3257_s29 = sshll.u32 %s3365_s24, 4  ;;  %s3258_s29 = int_to_ptr.vmem [resolvable:$false] %s3257_s29 }
  0x4c   : > { %s3259_s26 = scalar_lea.vmem %s3258_s29, 512  ;;  %p3260_p2 = scmp.lt.s32.totalorder %s3572_s0, %s3258_s29 }
  0x4d   : > { %p3255_p3 = pnand %p3253_p13, %p3213_p7  ;;  %p3261_p10 = scmp.lt.s32.totalorder %s3259_s26, %s3252_s21 }
  0x4f   : > { %p3256_p4 = pneg %p3255_p3  ;;  %p3262_p0 = por %p3261_p10, %p3260_p2 }
  0x51   : > { %p3263_p8 = pnand %p3262_p0, %p3256_p4 }
  0x53   : > { %3266 = shalt.err (!%p3263_p8)
}
  0x54   : > { %s4151_s23 = smov 4   ;;  %s4152_s1 = smov 64  }
  0x55   : > { %3102 = dma.hbm_to_vmem [thread:$0]  (!%p3528_p5), %s3569_s27, 256, %s3572_s0, %s3534_s28, %s4152_s1, %s4152_s1, %s4151_s23  }
  0x56   : > { %p4153_p7 = scmp.eq.s32.totalorder %s3575_s5, 0  ;;  %p4154_p13 = pneg %p3589_p1 }
  0x57   : > { %s3278_s26 = scalar_lea.vmem %s3593_s20, 256  ;;  %p3286_p11 = scmp.lt.s32.totalorder %s3593_s20, %s3593_s20 }
  0x58   : > { %p3093_p10 = pnand %p4154_p13, %p4153_p7  ;;  %p3279_p2 = scmp.ne.s32.totalorder %s3593_s20, %s3278_s26 }
  0x59   : > { %p3287_p12 = scmp.lt.s32.totalorder %s3278_s26, %s3278_s26 }
  0x5a   : > { %p3269_p0 = pneg %p3093_p10 }
  0x5b   : > { %p3288_p3 = por %p3287_p12, %p3286_p11 }
  0x5c   : > { %p3281_p6 = pnand %p3279_p2, %p3269_p0 }
  0x5e   : > { %p3282_p9 = pneg %p3281_p6 }
  0x60   : > { %p3289_p4 = pnand %p3288_p3, %p3282_p9 }
  0x62   : > { %3292 = shalt.err (!%p3289_p4)
}
  0x63   : > { %s3366_s25 = smov 128   ;;  %s3367_s3 = smov 8  }
  0x64   : > { %s4155_s27 = sld [smem:[#allocation19_spill]] }
  0x66   : > { %732 = sbr.rel (%p3589_p1) target bundleno = 4768 (0x12a0), region = 100 }
  0x6a   : > { %3095 = dma.hbm_to_vmem [thread:$0]  (!%p3093_p10), %s4155_s27, 256, %s3593_s20, [#allocation3], %s3366_s25, %s3366_s25, %s3367_s3  }
  0x6b   : > { %p4156_p5 = scmp.eq.s32.totalorder %s3575_s5, 0 }
  0x6d   : > { %3334 = dma.done.wait (%p4156_p5), [#allocation3], 256   ;;  %p4157_p8 = pmov %p4156_p5 }
  0x6e   : > { %s738_s0 = sand.u32 1, %s3575_s5   ;;  %s740_s21 = sand.u32 1, %s3351_s22  }
  0x6f   : > { %3336 = vsyncadd (%p4157_p8), [#allocation3], 4294967040  ;;  %s3644_s24 = sshll.u32 %s740_s21, 4  ;;  %s739_s29 = scalar_lea.sflag [#allocation6], %s738_s0 }
  0x70   : > { %s3647_s23 = scalar_lea.vmem [#allocation5], %s3644_s24  ;;  %p4159_p7 = scmp.ne.s32.totalorder %s4149_s2, 0 }
  0x71   : > { %4158 = sst [smem:[#allocation17_spill]] %s3647_s23 }
  0x72   : > { %3338 = dma.done.wait (%p4159_p7), %s739_s29, 512  }
  0x73   : > { %3340 = vsyncadd (%p4159_p7), %s739_s29, 4294966784  ;;  %p858_p1 = scmp.lt.s32.totalorder %s3575_s5, 1  ;;  %s4161_s30 = sld [smem:[#allocation21_spill]] }
  0x74   : > { %s4162_s21 = sld [smem:[#allocation22_spill]] }
  0x75   : > { %s3655_s4 = scalar_select %p858_p1, %s3575_s5, 1 }
  0x76   : > { %s4164_s19 = sld [smem:[#allocation23_spill]] }
  0x77   : > { %s2855_s20 = sshll.u32 %s3655_s4, 4  ;;  %s4165_s12 = sld [smem:[#allocation27_spill]] }
  0x78   : > { %s898_s6 = scalar_lea.vmem %s4107_s14, %s3655_s4 }
  0x79   : > { %s862_s28 = scalar_lea.vmem %s4161_s30, %s2855_s20  ;;  %s901_s30 = scalar_lea.vmem %s4108_s15, %s3655_s4 }
  0x7a   : > { %s3668_s29 = scalar_lea.vmem %s4162_s21, %s2855_s20  ;;  %s904_s21 = scalar_lea.vmem %s4109_s16, %s3655_s4 }
  0x7b   : > { %4163 = sst [smem:[#allocation18_spill]] %s3668_s29  ;;  %s2858_s29 = sshll.u32 %s3655_s4, 5 }
  0x7c   : > { %s3673_s18 = scalar_lea.vmem %s4164_s19, %s2855_s20  ;;  %s895_s20 = scalar_lea.vmem %s4106_s13, %s3655_s4 }
  0x7d   : > { %s3695_s22 = scalar_lea.vmem %s4165_s12, %s2858_s29  ;;  %s907_s29 = scalar_lea.vmem %s4110_s17, %s3655_s4 }
  0x7e   : > { %s751_s19 = scalar_lea.vmem [#allocation7], %s3644_s24  ;;  %s4166_s12 = sld [smem:[#allocation16_spill]] }
  0x84   : > { %p4167_p13 = scmp.ne.s32.totalorder %s4166_s12, 0 }
  0x86   : > { %912 = sbr.rel (%p4167_p13) target bundleno = 141 (0x8d), region = 116 }
  0x8b   : > { %v913_v0 = vld [vmem:[#allocation2] sm:$0xff]  ;;  %vm915_vm0 = vcmask 261120   ;;  %v914_v1 = vld [vmem:[#allocation2 + $0x8] sm:$0xff] }
  0x8c   : > { %916 = vst.msk [vmem:[#allocation8] sm:$0xff] %vm915_vm0, %v913_v0  ;;  %917 = vst.msk [vmem:[#allocation8 + $0x8] sm:$0xff] %vm915_vm0, %v914_v1 }
  0x8d PF: > { %v3155_v2 = vld [vmem:[%s862_s28 + $0x8] sm:$0xff]   ;;  %s4168_s5 = sld [smem:[#allocation18_spill]]  ;;  %v3368_v3 = vmov 0.0   ;;  %v3156_v4 = vld [vmem:[%s862_s28] sm:$0xff]   ;;  %vm3369_vm1 = vmmov 0   ;;  %vm959_vm2 = vcmask 261120   ;;  %s4170_s25 = scalar_lea.vmem %s4100_s7, %s3655_s4  ;;  %v1130_v48 = vlaneseq }
  0x8e   : > { %2916 = vmatprep.subr.bf16.mxu1 %v3368_v3  ;;  %2932 = vmatprep.subr.bf16.mxu0 %v3368_v3  ;;  %v3159_v10 = vld [vmem:[%s3673_s18 + $0x8] sm:$0xff]   ;;  %v3160_v11 = vld [vmem:[%s3673_s18] sm:$0xff]   ;;  %s4169_s2 = sld [smem:[#allocation20_spill]]  ;;  %v3370_v13 = vmov 0   ;;  %vm1157_vm3 = vcmask 64512   ;;  %s4173_s28 = scalar_lea.vmem %s4101_s8, %s3655_s4  ;;  %vm1283_vm4 = vcmask 1043456  }
  0x8f   : > { %2917 = vmatpush3.bf16.msra.mxu1 %v3155_v2  ;;  %2920 = vmatprep.mubr.msk.bf16.mxu1 %vm3369_vm1, %v3368_v3  ;;  %v2803_v19 = vld [vmem:[%s4170_s25] ss:$0 sm:$0xff]  ;;  %s4171_s0 = sld [smem:[#allocation25_spill]]  ;;  %v1138_v49 = vshrl.u32 %v1130_v48, 7  ;;  %v3804_v52 = vand.u32 127, %v1130_v48  ;;  %s3371_s23 = smov 120  }
  0x90   : > { %2918 = vmatprep.subr.bf16.mxu1 %v3368_v3  ;;  %2936 = vmatprep.mubr.msk.bf16.mxu0 %vm3369_vm1, %v3368_v3  ;;  %v2807_v37 = vld [vmem:[%s4173_s28] ss:$0 sm:$0xff]  ;;  %s4174_s26 = sld [smem:[#allocation17_spill]]  ;;  %s3372_s18 = smov 112   ;;  %vm2402_vm7 = vcmask 523264  }
  0x91   : > { %2933 = vmatpush3.bf16.msra.mxu0 %v3159_v10  ;;  %3154 = vset.pattern.permute.xlu0 %v3370_v13  ;;  %v1139_v50 = vsub.s32 0, %v1138_v49  ;;  %s4175_s3 = scalar_lea.vmem %s4102_s9, %s3655_s4  ;;  %s3373_s27 = smov 104  }
  0x92   : > { %2934 = vmatprep.subr.bf16.mxu0 %v3368_v3 }
  0x93   : > { %v3724_v5 = vld [vmem:[#allocation8] sm:$0xff]  ;;  %v3726_v6 = vld [vmem:[#allocation8 + $0x8] sm:$0xff]  ;;  %v3157_v7 = vld [vmem:[%s4168_s5 + $0x8] sm:$0xff]   ;;  %2919 = vmatpush3.bf16.msra.mxu1 %v3156_v4 }
  0x94   : > { %v920_v8 = vpack.c.bf16 %v3726_v6, %v3724_v5  ;;  %2924 = vmatprep.subr.bf16.mxu1 %v3368_v3  ;;  %v3158_v9 = vld [vmem:[%s4168_s5] sm:$0xff]  }
  0x95   : > { %2935 = vmatpush3.bf16.msra.mxu0 %v3160_v11  ;;  %v1132_v12 = vld [vmem:[%s4169_s2] sm:$0x1]  ;;  %v1133_v14 = vld [vmem:[%s4169_s2 + $0x1] sm:$0x1]  ;;  %s4172_s10 = scalar_lea.vmem %s4171_s0, %s3655_s4 }
  0x96   : > { %2921 = vmatmul.mubr.msk.bf16.vlgmr.msra.gmra.mxu1 %vm959_vm2, %v920_v8  ;;  %2946 = vmatprep.subr.bf16.mxu0 %v3368_v3  ;;  %v2799_v20 = vld [vmem:[%s4172_s10] ss:$0 sm:$0xff] }
  0x97   : > { %2925 = vmatpush3.bf16.msra.mxu1 %v3157_v7  ;;  %2928 = vmatprep.mubr.msk.bf16.mxu1 %vm3369_vm1, %v3368_v3 }
  0x98   : > { %2926 = vmatprep.subr.bf16.mxu1 %v3368_v3  ;;  %2937 = vmatmul.mubr.msk.bf16.vlgmr.msra.gmra.mxu0 %vm959_vm2, %v920_v8 }
  0x99   : > { %2948 = vmatprep.mubr.msk.bf16.mxu0 %vm3369_vm1, %v3368_v3  ;;  %1135 = vperm.xlu0 %3154, %v1132_v12  }
  0x9b   : > { %2927 = vmatpush3.bf16.msra.mxu1 %v3158_v9 }
  0x9c   : > { %2940 = vmatprep.subr.bf16.mxu1 %v3368_v3 }
  0x9d   : > { %1142 = vperm.xlu0 %3154, %v1133_v14  }
  0x9e   : > { %2929 = vmatmul.mubr.msk.bf16.vlgmr.msra.gmra.mxu1 %vm959_vm2, %v920_v8 }
  0x9f   : > { %2942 = vmatprep.mubr.msk.bf16.mxu1 %vm3369_vm1, %v3368_v3 }
 0x114   : > { %v1136_v51 = vpop.permute.xlu0 %1135 }
 0x115   : > { %v3806_v53 = vrot.slane %v1136_v51, %v1139_v50 }
 0x117   : > { %vm1148_vm5 = vcmp.ge.s32.totalorder %v3804_v52, %v3806_v53 }
 0x118   : > { %v1143_v54 = vpop.permute.xlu0 %1142 }
 0x119   : > { %v3810_v55 = vrot.slane %v1143_v54, %v1139_v50 }
 0x11b   : > { %vm1149_vm6 = vcmp.ge.s32.totalorder %v3804_v52, %v3810_v55 }
 0x156   : > { %v997_v15 = vpop.f32.mrf.mxu1 }
 0x157   : > { %v998_v24 = vadd.f32 %v2799_v20, %v997_v15 }
 0x158   : > { %v2922_v16 = vpop.f32.mrf.mxu1  ;;  %v1117_v38 = vpop.f32.mrf.mxu0 }
 0x159   : > { %v1004_v30 = vmul.f32 0.35355338, %v998_v24  ;;  %v1118_v40 = vadd.f32 %v2807_v37, %v1117_v38 }
 0x15a   : > { %v1000_v17 = vpop.f32.mrf.mxu1  ;;  %v2938_v39 = vpop.f32.mrf.mxu0 }
 0x15b   : > { %v1001_v31 = vadd.f32 %v2799_v20, %v1000_v17  ;;  %v3776_v34 = vpack.c.bf16 %v1004_v30, %v1004_v30  ;;  %v3794_v44 = vpack.c.bf16 %v1118_v40, %v1118_v40  ;;  %v933_v30 = vld [vmem:[%s4174_s26] sm:$0xf] }
 0x15c   : > { %v2923_v18 = vpop.f32.mrf.mxu1  ;;  %v1120_v41 = vpop.f32.mrf.mxu0 }
 0x15d   : > { %v1005_v35 = vmul.f32 0.35355338, %v1001_v31  ;;  %v1121_v42 = vadd.f32 %v2807_v37, %v1120_v41  ;;  %v1285_v46 = vsel %vm1283_vm4, %v3794_v44, 0  ;;  %v1378_v31 = vsel %vm1283_vm4, %v933_v30, 0 }
 0x15e   : > { %v1058_v21 = vpop.f32.mrf.mxu1  ;;  %v2939_v43 = vpop.f32.mrf.mxu0 }
 0x15f   : > { %v1059_v22 = vadd.f32 %v2803_v19, %v1058_v21  ;;  %v3783_v36 = vpack.c.bf16 %v1005_v35, %v1005_v35  ;;  %v3796_v45 = vpack.c.bf16 %v1121_v42, %v1121_v42 }
 0x160   : > { %v2930_v23 = vpop.f32.mrf.mxu1 }
 0x161   : > { %v3767_v25 = vpack.c.bf16 %v1059_v22, %v1059_v22  ;;  %v1331_v47 = vsel %vm1283_vm4, %v3796_v45, 0 }
 0x162   : > { %v1061_v26 = vpop.f32.mrf.mxu1 }
 0x163   : > { %v1062_v27 = vadd.f32 %v2803_v19, %v1061_v26  ;;  %v1162_v28 = vsel %vm1157_vm3, %v3767_v25, 0 }
 0x164   : > { %v2931_v29 = vpop.f32.mrf.mxu1  ;;  %2941 = vmatpush3.bf16.xpose.msra.mxu1 %v1162_v28 }
 0x165   : > { %v3771_v32 = vpack.c.bf16 %v1062_v27, %v1062_v27  ;;  %2952 = vmatprep.subr.bf16.mxu1 %v3368_v3 }
 0x167   : > { %v1208_v33 = vsel %vm1157_vm3, %v3771_v32, 0 }
 0x168   : > { %2947 = vmatpush3.bf16.xpose.msra.mxu0 %v1208_v33 }
 0x169   : > { %2958 = vmatprep.subr.bf16.mxu0 %v3368_v3 }
 0x16b   : > { %2943 = vmatmul.mubr.msk.bf16.vlgmr.msra.gmra.mxu1 %vm1157_vm3, %v3776_v34 }
 0x16c   : > { %2954 = vmatprep.mubr.msk.bf16.mxu1 %vm3369_vm1, %v3368_v3  ;;  %2953 = vmatpush3.bf16.msra.mxu1 %v1285_v46 }
 0x16d   : > { %2964 = vmatprep.subr.bf16.mxu1 %v3368_v3 }
 0x16f   : > { %2949 = vmatmul.mubr.msk.bf16.vlgmr.msra.gmra.mxu0 %vm1157_vm3, %v3783_v36 }
 0x170   : > { %2960 = vmatprep.mubr.msk.bf16.mxu0 %vm3369_vm1, %v3368_v3  ;;  %2959 = vmatpush3.bf16.msra.mxu0 %v1331_v47 }
 0x171   : > { %2970 = vmatprep.subr.bf16.mxu0 %v3368_v3 }
 0x22b   : > { %v1198_v56 = vpop.f32.mrf.mxu1 }
 0x22c   : > { %v1254_v57 = vsel %vm1148_vm5, -1e+30, %v1198_v56 }
 0x22d   : > { %v2944_v58 = vpop.f32.mrf.mxu1  ;;  %v1256_v59 = vsel %vm1157_vm3, %v1254_v57, -inf }
 0x22e   : > { %1257 = vmax.xlane.f32.xlu1 %v1256_v59 }
 0x22f   : > { %v1201_v60 = vpop.f32.mrf.mxu1  ;;  %v1244_v61 = vpop.f32.mrf.mxu0 }
 0x230   : > { %v1255_v62 = vsel %vm1149_vm6, -1e+30, %v1244_v61 }
 0x231   : > { %v2945_v63 = vpop.f32.mrf.mxu1  ;;  %v2950_v0 = vpop.f32.mrf.mxu0  ;;  %v1259_v1 = vsel %vm1157_vm3, %v1255_v62, -inf }
 0x232   : > { %1260 = vmax.xlane.f32.xlu1 %v1259_v1 }
 0x233   : > { %v1247_v2 = vpop.f32.mrf.mxu0 }
 0x235   : > { %v2951_v4 = vpop.f32.mrf.mxu0 }
 0x2b7   : > { %v1258_v7 = vpop.xlane.xlu1 %1257 }
 0x2b8   : > { %v1262_v8 = vsub.f32 %v1254_v57, %v1258_v7 }
 0x2ba   : > { %v1264_v9 = vmul.f32 1.442695, %v1262_v8 }
 0x2bb   : > { %v1261_v10 = vpop.xlane.xlu1 %1260 }
 0x2bc   : > { %3167 = vpow2.f32 %v1264_v9  ;;  %v1263_v11 = vsub.f32 %v1255_v62, %v1261_v10 }
 0x2be   : > { %v1266_v12 = vmul.f32 1.442695, %v1263_v11 }
 0x2c0   : > { %3169 = vpow2.f32 %v1266_v12 }
 0x2c9   : > { %v3168_v13 = vpop.eup %3167 }
 0x2ca   : > { %v1268_v14 = vsel %vm1157_vm3, %v3168_v13, 0.0 }
 0x2cb   : > { %1269 = vadd.xlane.f32.xlu0 %v1268_v14 }
 0x2cd   : > { %v3170_v15 = vpop.eup %3169 }
 0x2ce   : > { %v1271_v16 = vsel %vm1157_vm3, %v3170_v15, 0.0 }
 0x2cf   : > { %1272 = vadd.xlane.f32.xlu1 %v1271_v16 }
 0x2e0   : > { %1427 = vrot.lane.b32.xlu1 %v3767_v25, %s3371_s23 }
 0x2e4   : > { %1479 = vrot.lane.b32.xlu1 %v3771_v32, %s3371_s23 }
 0x2e8   : > { %1424 = vrot.lane.b32.xlu1 %v3776_v34, %s3371_s23 }
 0x2ec   : > { %1476 = vrot.lane.b32.xlu1 %v3783_v36, %s3371_s23 }
 0x354   : > { %v1270_v17 = vpop.xlane.xlu0 %1269 }
 0x355   : > { %3171 = vrcp.f32 %v1270_v17 }
 0x358   : > { %v1273_v18 = vpop.xlane.xlu1 %1272 }
 0x359   : > { %3173 = vrcp.f32 %v1273_v18 }
 0x35c   : > { %v1428_v23 = vpop.permute.xlu1 %1427 }
 0x35d   : > { %v1433_v27 = vsel %vm1157_vm3, %v1428_v23, 0 }
 0x360   : > { %v1480_v28 = vpop.permute.xlu1 %1479 }
 0x361   : > { %v1485_v42 = vsel %vm1157_vm3, %v1480_v28, 0 }
 0x362   : > { %v3172_v19 = vpop.eup %3171 }
 0x363   : > { %v1276_v20 = vmul.f32 %v3172_v19, %v3168_v13 }
 0x364   : > { %v1425_v29 = vpop.permute.xlu1 %1424 }
 0x365   : > { %v1278_v21 = vpack.c.bf16 %v1276_v20, %v1276_v20 }
 0x366   : > { %v3174_v22 = vpop.eup %3173 }
 0x367   : > { %2955 = vmatmul.mubr.msk.bf16.vlgmr.msra.gmra.mxu1 %vm1157_vm3, %v1278_v21  ;;  %v1277_v24 = vmul.f32 %v3174_v22, %v3170_v15  ;;  %v934_v22 = vld [vmem:[%s4174_s26 + $0x4] sm:$0xf] }
 0x368   : > { %2966 = vmatprep.mubr.msk.bf16.mxu1 %vm3369_vm1, %v3368_v3  ;;  %2965 = vmatpush3.bf16.msra.mxu1 %v1378_v31  ;;  %v1477_v49 = vpop.permute.xlu1 %1476  ;;  %v1656_v23 = vsel %vm1283_vm4, %v934_v22, 0 }
 0x369   : > { %v1279_v26 = vpack.c.bf16 %v1277_v24, %v1277_v24  ;;  %2976 = vmatprep.subr.bf16.mxu1 %v3368_v3 }
 0x36b   : > { %2961 = vmatmul.mubr.msk.bf16.vlgmr.msra.gmra.mxu0 %vm1157_vm3, %v1279_v26 }
 0x36c   : > { %2971 = vmatpush3.bf16.xpose.msra.mxu0 %v1433_v27  ;;  %2972 = vmatprep.mubr.msk.bf16.mxu0 %vm3369_vm1, %v3368_v3 }
 0x36d   : > { %2982 = vmatprep.subr.bf16.mxu0 %v3368_v3 }
 0x373   : > { %2973 = vmatmul.mubr.msk.bf16.vlgmr.msra.gmra.mxu0 %vm1157_vm3, %v1425_v29 }
 0x374   : > { %2984 = vmatprep.mubr.msk.bf16.mxu0 %vm3369_vm1, %v3368_v3 }
 0x427   : > { %v1321_v33 = vpop.f32.mrf.mxu1 }
 0x429   : > { %v2956_v35 = vpop.f32.mrf.mxu1 }
 0x42b   : > { %v1324_v37 = vpop.f32.mrf.mxu1  ;;  %v1367_v38 = vpop.f32.mrf.mxu0 }
 0x42c   : > { %v1373_v39 = vpack.c.bf16 %v1367_v38, %v1321_v33 }
 0x42d   : > { %v2957_v40 = vpop.f32.mrf.mxu1  ;;  %v2962_v41 = vpop.f32.mrf.mxu0 }
 0x42e   : > { %2967 = vmatmul.mubr.msk.bf16.vlgmr.msra.gmra.mxu1 %vm1157_vm3, %v1373_v39 }
 0x42f   : > { %2977 = vmatpush3.bf16.xpose.msra.mxu1 %v1485_v42  ;;  %v1370_v43 = vpop.f32.mrf.mxu0  ;;  %2978 = vmatprep.mubr.msk.bf16.mxu1 %vm3369_vm1, %v3368_v3 }
 0x430   : > { %2988 = vmatprep.subr.bf16.mxu1 %v3368_v3 }
 0x431   : > { %v2963_v46 = vpop.f32.mrf.mxu0 }
 0x433   : > { %v1469_v47 = vpop.f32.mrf.mxu0 }
 0x434   : > { %v1527_v48 = vsel %vm1148_vm5, -1e+30, %v1469_v47 }
 0x435   : > { %v2974_v50 = vpop.f32.mrf.mxu0  ;;  %v1529_v51 = vsel %vm1157_vm3, %v1527_v48, -inf }
 0x436   : > { %1530 = vmax.xlane.f32.xlu0 %v1529_v51  ;;  %2979 = vmatmul.mubr.msk.bf16.vlgmr.msra.gmra.mxu1 %vm1157_vm3, %v1477_v49 }
 0x437   : > { %v1472_v54 = vpop.f32.mrf.mxu0  ;;  %2990 = vmatprep.mubr.msk.bf16.mxu1 %vm3369_vm1, %v3368_v3 }
 0x439   : > { %v2975_v56 = vpop.f32.mrf.mxu0 }
 0x4bf   : > { %v1531_v57 = vpop.xlane.xlu0 %1530 }
 0x4c0   : > { %v1535_v58 = vsub.f32 %v1527_v48, %v1531_v57 }
 0x4c2   : > { %v1537_v59 = vmul.f32 1.442695, %v1535_v58 }
 0x4c4   : > { %3175 = vpow2.f32 %v1537_v59 }
 0x4d1   : > { %v3176_v60 = vpop.eup %3175 }
 0x4d2   : > { %v1541_v61 = vsel %vm1157_vm3, %v3176_v60, 0.0 }
 0x4d3   : > { %1542 = vadd.xlane.f32.xlu0 %v1541_v61 }
 0x4e9   : > { %1554 = vrot.lane.b32.xlu0 %v3794_v44, %s3371_s23 }
 0x4ee   : > { %v3861_v62 = vpop.f32.mrf.mxu1 }
 0x4f0   : > { %v2968_v63 = vpop.f32.mrf.mxu1 }
 0x4f2   : > { %v3863_v0 = vpop.f32.mrf.mxu1 }
 0x4f4   : > { %v2969_v1 = vpop.f32.mrf.mxu1 }
 0x4f6   : > { %v1521_v2 = vpop.f32.mrf.mxu1 }
 0x4f7   : > { %v1528_v4 = vsel %vm1149_vm6, -1e+30, %v1521_v2 }
 0x4f8   : > { %v2980_v7 = vpop.f32.mrf.mxu1  ;;  %v1532_v8 = vsel %vm1157_vm3, %v1528_v4, -inf }
 0x4f9   : > { %1533 = vmax.xlane.f32.xlu1 %v1532_v8 }
 0x4fa   : > { %v1524_v9 = vpop.f32.mrf.mxu1 }
 0x4fc   : > { %v2981_v10 = vpop.f32.mrf.mxu1 }
 0x50a   : > { %1753 = vrot.lane.b32.xlu1 %v3771_v32, %s3372_s18 }
 0x55c   : > { %v1543_v11 = vpop.xlane.xlu0 %1542 }
 0x55d   : > { %3177 = vrcp.f32 %v1543_v11 }
 0x560   : > { %v1555_v12 = vpop.permute.xlu0 %1554 }
 0x561   : > { %v1560_v13 = vsel %vm1283_vm4, %v1555_v12, 0 }
 0x562   : > { %2983 = vmatpush3.bf16.msra.mxu0 %v1560_v13 }
 0x563   : > { %2994 = vmatprep.subr.bf16.mxu0 %v3368_v3 }
 0x56a   : > { %v3178_v14 = vpop.eup %3177 }
 0x56b   : > { %v1549_v15 = vmul.f32 %v3178_v14, %v3176_v60 }
 0x56d   : > { %v1551_v16 = vpack.c.bf16 %v1549_v15, %v1549_v15 }
 0x56f   : > { %2985 = vmatmul.mubr.msk.bf16.vlgmr.msra.gmra.mxu0 %vm1157_vm3, %v1551_v16 }
 0x570   : > { %2996 = vmatprep.mubr.msk.bf16.mxu0 %vm3369_vm1, %v3368_v3  ;;  %2995 = vmatpush3.bf16.msra.mxu0 %v1656_v23 }
 0x571   : > { %3006 = vmatprep.subr.bf16.mxu0 %v3368_v3 }
 0x582   : > { %v1534_v17 = vpop.xlane.xlu1 %1533 }
 0x583   : > { %v1536_v18 = vsub.f32 %v1528_v4, %v1534_v17  ;;  %v2811_v4 = vld [vmem:[%s4175_s3] ss:$0 sm:$0xff] }
 0x584   : > { %v1421_v7 = vadd.f32 %v2811_v4, %v3861_v62  ;;  %v1422_v11 = vadd.f32 %v2811_v4, %v3863_v0 }
 0x585   : > { %v1539_v19 = vmul.f32 1.442695, %v1536_v18 }
 0x586   : > { %v1754_v41 = vpop.permute.xlu1 %1753 }
 0x587   : > { %3179 = vpow2.f32 %v1539_v19  ;;  %v1759_v47 = vsel %vm1157_vm3, %v1754_v41, 0 }
 0x594   : > { %v3180_v20 = vpop.eup %3179 }
 0x595   : > { %v1544_v21 = vsel %vm1157_vm3, %v3180_v20, 0.0 }
 0x596   : > { %1545 = vadd.xlane.f32.xlu0 %v1544_v21 }
 0x5ac   : > { %1603 = vrot.lane.b32.xlu0 %v3796_v45, %s3371_s23 }
 0x5b0   : > { %1703 = vrot.lane.b32.xlu0 %v3767_v25, %s3372_s18 }
 0x5b4   : > { %1701 = vrot.lane.b32.xlu0 %v3776_v34, %s3372_s18 }
 0x5b8   : > { %1751 = vrot.lane.b32.xlu0 %v3783_v36, %s3372_s18 }
 0x61f   : > { %v1546_v24 = vpop.xlane.xlu0 %1545 }
 0x620   : > { %3181 = vrcp.f32 %v1546_v24 }
 0x623   : > { %v1604_v26 = vpop.permute.xlu0 %1603 }
 0x624   : > { %v1609_v27 = vsel %vm1283_vm4, %v1604_v26, 0 }
 0x625   : > { %2989 = vmatpush3.bf16.msra.mxu1 %v1609_v27 }
 0x626   : > { %3000 = vmatprep.subr.bf16.mxu1 %v3368_v3 }
 0x627   : > { %v1704_v30 = vpop.permute.xlu0 %1703 }
 0x628   : > { %v1709_v37 = vsel %vm1157_vm3, %v1704_v30, 0 }
 0x62b   : > { %v1702_v40 = vpop.permute.xlu0 %1701 }
 0x62d   : > { %v3182_v28 = vpop.eup %3181 }
 0x62e   : > { %v1550_v29 = vmul.f32 %v3182_v28, %v3180_v20 }
 0x62f   : > { %v1596_v31 = vpop.f32.mrf.mxu0  ;;  %v1752_v54 = vpop.permute.xlu0 %1751 }
 0x630   : > { %v1552_v33 = vpack.c.bf16 %v1550_v29, %v1550_v29 }
 0x631   : > { %v2986_v35 = vpop.f32.mrf.mxu0 }
 0x632   : > { %2991 = vmatmul.mubr.msk.bf16.vlgmr.msra.gmra.mxu1 %vm1157_vm3, %v1552_v33 }
 0x633   : > { %3001 = vmatpush3.bf16.xpose.msra.mxu1 %v1709_v37  ;;  %v1599_v38 = vpop.f32.mrf.mxu0  ;;  %3002 = vmatprep.mubr.msk.bf16.mxu1 %vm3369_vm1, %v3368_v3 }
 0x634   : > { %3012 = vmatprep.subr.bf16.mxu1 %v3368_v3 }
 0x635   : > { %v2987_v39 = vpop.f32.mrf.mxu0 }
 0x636   : > { %v935_v39 = vld [vmem:[%s4174_s26 + $0x8] sm:$0xf] }
 0x63a   : > { %3003 = vmatmul.mubr.msk.bf16.vlgmr.msra.gmra.mxu1 %vm1157_vm3, %v1702_v40  ;;  %v1928_v40 = vsel %vm1283_vm4, %v935_v39, 0 }
 0x63b   : > { %3014 = vmatprep.mubr.msk.bf16.mxu1 %vm3369_vm1, %v3368_v3 }
 0x6f2   : > { %v1645_v42 = vpop.f32.mrf.mxu1 }
 0x6f3   : > { %v1651_v43 = vpack.c.bf16 %v1645_v42, %v1596_v31 }
 0x6f4   : > { %v2992_v46 = vpop.f32.mrf.mxu1 }
 0x6f5   : > { %2997 = vmatmul.mubr.msk.bf16.vlgmr.msra.gmra.mxu0 %vm1157_vm3, %v1651_v43 }
 0x6f6   : > { %3007 = vmatpush3.bf16.xpose.msra.mxu0 %v1759_v47  ;;  %v1648_v48 = vpop.f32.mrf.mxu1  ;;  %3008 = vmatprep.mubr.msk.bf16.mxu0 %vm3369_vm1, %v3368_v3 }
 0x6f7   : > { %3018 = vmatprep.subr.bf16.mxu0 %v3368_v3 }
 0x6f8   : > { %v2993_v49 = vpop.f32.mrf.mxu1 }
 0x6fa   : > { %v1745_v50 = vpop.f32.mrf.mxu1 }
 0x6fb   : > { %v1801_v51 = vsel %vm1148_vm5, -1e+30, %v1745_v50 }
 0x6fc   : > { %v3004_v56 = vpop.f32.mrf.mxu1  ;;  %v1803_v57 = vsel %vm1157_vm3, %v1801_v51, -inf }
 0x6fd   : > { %3009 = vmatmul.mubr.msk.bf16.vlgmr.msra.gmra.mxu0 %vm1157_vm3, %v1752_v54  ;;  %1804 = vmax.xlane.f32.xlu0 %v1803_v57 }
 0x6fe   : > { %v1748_v58 = vpop.f32.mrf.mxu1  ;;  %3020 = vmatprep.mubr.msk.bf16.mxu0 %vm3369_vm1, %v3368_v3 }
 0x700   : > { %v3005_v59 = vpop.f32.mrf.mxu1 }
 0x786   : > { %v1805_v60 = vpop.xlane.xlu0 %1804 }
 0x787   : > { %v1809_v61 = vsub.f32 %v1801_v51, %v1805_v60 }
 0x789   : > { %v1811_v63 = vmul.f32 1.442695, %v1809_v61 }
 0x78b   : > { %3183 = vpow2.f32 %v1811_v63 }
 0x798   : > { %v3184_v1 = vpop.eup %3183 }
 0x799   : > { %v1815_v2 = vsel %vm1157_vm3, %v3184_v1, 0.0 }
 0x79a   : > { %1816 = vadd.xlane.f32.xlu0 %v1815_v2 }
 0x7b5   : > { %v1692_v8 = vpop.f32.mrf.mxu0 }
 0x7b6   : > { %v3917_v9 = vadd.f32 %v1692_v8, %v1421_v7 }
 0x7b7   : > { %v2998_v10 = vpop.f32.mrf.mxu0 }
 0x7b9   : > { %v1695_v12 = vpop.f32.mrf.mxu0 }
 0x7ba   : > { %v3920_v13 = vadd.f32 %v1695_v12, %v1422_v11 }
 0x7bb   : > { %v2999_v14 = vpop.f32.mrf.mxu0 }
 0x7bd   : > { %v1795_v15 = vpop.f32.mrf.mxu0 }
 0x7be   : > { %v1802_v16 = vsel %vm1149_vm6, -1e+30, %v1795_v15 }
 0x7bf   : > { %v3010_v17 = vpop.f32.mrf.mxu0  ;;  %v1806_v18 = vsel %vm1157_vm3, %v1802_v16, -inf }
 0x7c0   : > { %1807 = vmax.xlane.f32.xlu1 %v1806_v18 }
 0x7c1   : > { %v1798_v62 = vpop.f32.mrf.mxu0 }
 0x7c3   : > { %v3011_v19 = vpop.f32.mrf.mxu0 }
 0x7d1   : > { %1875 = vrot.lane.b32.xlu1 %v3796_v45, %s3372_s18 }
 0x7d5   : > { %1975 = vrot.lane.b32.xlu1 %v3767_v25, %s3373_s27 }
 0x7d9   : > { %1973 = vrot.lane.b32.xlu1 %v3776_v34, %s3373_s27 }
 0x823   : > { %v1817_v25 = vpop.xlane.xlu0 %1816 }
 0x849   : > { %v1808_v0 = vpop.xlane.xlu1 %1807 }
 0x84a   : > { %v1810_v20 = vsub.f32 %v1802_v16, %v1808_v0 }
 0x84c   : > { %v1813_v21 = vmul.f32 1.442695, %v1810_v20 }
 0x84d   : > { %v1876_v22 = vpop.permute.xlu1 %1875 }
 0x84e   : > { %3185 = vpow2.f32 %v1813_v21  ;;  %v1881_v23 = vsel %vm1283_vm4, %v1876_v22, 0 }
 0x84f   : > { %3019 = vmatpush3.bf16.msra.mxu0 %v1881_v23  ;;  %3187 = vrcp.f32 %v1817_v25 }
 0x850   : > { %3030 = vmatprep.subr.bf16.mxu0 %v3368_v3 }
 0x851   : > { %v1976_v33 = vpop.permute.xlu1 %1975 }
 0x852   : > { %v1981_v37 = vsel %vm1157_vm3, %v1976_v33, 0 }
 0x855   : > { %v1974_v38 = vpop.permute.xlu1 %1973 }
 0x85b   : > { %v3186_v24 = vpop.eup %3185 }
 0x85c   : > { %v1818_v26 = vsel %vm1157_vm3, %v3186_v24, 0.0  ;;  %v3188_v34 = vpop.eup %3187 }
 0x85d   : > { %1819 = vadd.xlane.f32.xlu0 %v1818_v26  ;;  %v1823_v28 = vmul.f32 %v3188_v34, %v3184_v1  ;;  %v936_v34 = vld [vmem:[%s4174_s26 + $0xc] sm:$0xf] }
 0x85f   : > { %v1825_v31 = vpack.c.bf16 %v1823_v28, %v1823_v28 }
 0x873   : > { %1827 = vrot.lane.b32.xlu0 %v3794_v44, %s3372_s18  ;;  %s4177_s18 = sld [smem:[#allocation16_spill]] }
 0x877   : > { %2025 = vrot.lane.b32.xlu0 %v3771_v32, %s3373_s27 }
 0x879   : > { %p2846_p10 = scmp.ne.s32.totalorder %s4177_s18, 1 }
 0x87a   : > { %s4179_s3 = sld [smem:[#allocation29_spill]] (!%p2846_p10) }
 0x87b   : > { %2023 = vrot.lane.b32.xlu0 %v3783_v36, %s3373_s27 }
 0x8e6   : > { %v1820_v27 = vpop.xlane.xlu0 %1819 }
 0x8e7   : > { %3189 = vrcp.f32 %v1820_v27  ;;  %v2200_v27 = vsel %vm1283_vm4, %v936_v34, 0 }
 0x8ea   : > { %v1828_v29 = vpop.permute.xlu0 %1827 }
 0x8eb   : > { %v1833_v30 = vsel %vm1283_vm4, %v1828_v29, 0 }
 0x8ec   : > { %3013 = vmatpush3.bf16.msra.mxu1 %v1833_v30 }
 0x8ed   : > { %3024 = vmatprep.subr.bf16.mxu1 %v3368_v3 }
 0x8ee   : > { %v2026_v47 = vpop.permute.xlu0 %2025 }
 0x8ef   : > { %3015 = vmatmul.mubr.msk.bf16.vlgmr.msra.gmra.mxu1 %vm1157_vm3, %v1825_v31  ;;  %v2031_v51 = vsel %vm1157_vm3, %v2026_v47, 0 }
 0x8f0   : > { %3026 = vmatprep.mubr.msk.bf16.mxu1 %vm3369_vm1, %v3368_v3  ;;  %3025 = vmatpush3.bf16.msra.mxu1 %v1928_v40 }
 0x8f1   : > { %3036 = vmatprep.subr.bf16.mxu1 %v3368_v3 }
 0x8f2   : > { %v2024_v59 = vpop.permute.xlu0 %2023 }
 0x8f4   : > { %v3190_v32 = vpop.eup %3189 }
 0x8f5   : > { %v1824_v36 = vmul.f32 %v3190_v32, %v3186_v24 }
 0x8f7   : > { %v1826_v35 = vpack.c.bf16 %v1824_v36, %v1824_v36 }
 0x8f9   : > { %3021 = vmatmul.mubr.msk.bf16.vlgmr.msra.gmra.mxu0 %vm1157_vm3, %v1826_v35 }
 0x8fa   : > { %3031 = vmatpush3.bf16.xpose.msra.mxu0 %v1981_v37  ;;  %3032 = vmatprep.mubr.msk.bf16.mxu0 %vm3369_vm1, %v3368_v3 }
 0x8fb   : > { %3042 = vmatprep.subr.bf16.mxu0 %v3368_v3 }
 0x901   : > { %3033 = vmatmul.mubr.msk.bf16.vlgmr.msra.gmra.mxu0 %vm1157_vm3, %v1974_v38 }
 0x902   : > { %3044 = vmatprep.mubr.msk.bf16.mxu0 %vm3369_vm1, %v3368_v3 }
 0x9af   : > { %v1869_v41 = vpop.f32.mrf.mxu1 }
 0x9b1   : > { %v3016_v42 = vpop.f32.mrf.mxu1 }
 0x9b3   : > { %v1872_v43 = vpop.f32.mrf.mxu1 }
 0x9b5   : > { %v3017_v46 = vpop.f32.mrf.mxu1 }
 0x9b9   : > { %v1917_v48 = vpop.f32.mrf.mxu0 }
 0x9ba   : > { %v1923_v49 = vpack.c.bf16 %v1917_v48, %v1869_v41 }
 0x9bb   : > { %v3022_v50 = vpop.f32.mrf.mxu0 }
 0x9bc   : > { %3027 = vmatmul.mubr.msk.bf16.vlgmr.msra.gmra.mxu1 %vm1157_vm3, %v1923_v49 }
 0x9bd   : > { %3037 = vmatpush3.bf16.xpose.msra.mxu1 %v2031_v51  ;;  %v1920_v54 = vpop.f32.mrf.mxu0  ;;  %3038 = vmatprep.mubr.msk.bf16.mxu1 %vm3369_vm1, %v3368_v3 }
 0x9be   : > { %3048 = vmatprep.subr.bf16.mxu1 %v3368_v3 }
 0x9bf   : > { %v3023_v56 = vpop.f32.mrf.mxu0 }
 0x9c1   : > { %v2017_v57 = vpop.f32.mrf.mxu0 }
 0x9c2   : > { %v2073_v58 = vsel %vm1148_vm5, -1e+30, %v2017_v57 }
 0x9c3   : > { %v3034_v60 = vpop.f32.mrf.mxu0  ;;  %v2075_v61 = vsel %vm1157_vm3, %v2073_v58, -inf }
 0x9c4   : > { %2076 = vmax.xlane.f32.xlu1 %v2075_v61  ;;  %3039 = vmatmul.mubr.msk.bf16.vlgmr.msra.gmra.mxu1 %vm1157_vm3, %v2024_v59 }
 0x9c5   : > { %v2020_v63 = vpop.f32.mrf.mxu0  ;;  %3050 = vmatprep.mubr.msk.bf16.mxu1 %vm3369_vm1, %v3368_v3 }
 0x9c7   : > { %v3035_v1 = vpop.f32.mrf.mxu0 }
 0xa4d   : > { %v2077_v2 = vpop.xlane.xlu1 %2076 }
 0xa4e   : > { %v2081_v4 = vsub.f32 %v2073_v58, %v2077_v2 }
 0xa50   : > { %v2083_v7 = vmul.f32 1.442695, %v2081_v4 }
 0xa52   : > { %3191 = vpow2.f32 %v2083_v7 }
 0xa5f   : > { %v3192_v62 = vpop.eup %3191 }
 0xa7c   : > { %v1964_v8 = vpop.f32.mrf.mxu1 }
 0xa7d   : > { %v1971_v53 = vadd.f32 %v1964_v8, %v3917_v9  ;;  %v2087_v9 = vsel %vm1157_vm3, %v3192_v62, 0.0  ;;  %v3162_v8 = vld [vmem:[%s751_s19] sm:$0xff]  }
 0xa7e   : > { %v3028_v10 = vpop.f32.mrf.mxu1 }
 0xa80   : > { %v1967_v11 = vpop.f32.mrf.mxu1 }
 0xa81   : > { %v3971_v12 = vadd.f32 %v1967_v11, %v3920_v13 }
 0xa82   : > { %v3029_v14 = vpop.f32.mrf.mxu1 }
 0xa84   : > { %v2067_v15 = vpop.f32.mrf.mxu1 }
 0xa85   : > { %v2074_v16 = vsel %vm1149_vm6, -1e+30, %v2067_v15 }
 0xa86   : > { %v3040_v17 = vpop.f32.mrf.mxu1  ;;  %v2078_v18 = vsel %vm1157_vm3, %v2074_v16, -inf }
 0xa87   : > { %2079 = vmax.xlane.f32.xlu0 %v2078_v18 }
 0xa88   : > { %v2070_v19 = vpop.f32.mrf.mxu1 }
 0xa8a   : > { %v3041_v0 = vpop.f32.mrf.mxu1 }
 0xa8b   : > { %2088 = vadd.xlane.f32.xlu0 %v2087_v9 }
 0xaa1   : > { %2099 = vrot.lane.b32.xlu0 %v3794_v44, %s3373_s27 }
 0xb10   : > { %v2080_v13 = vpop.xlane.xlu0 %2079 }
 0xb11   : > { %v2082_v20 = vsub.f32 %v2074_v16, %v2080_v13  ;;  %v2833_v13 = vld [vmem:[%s901_s30] ss:$0 sm:$0xff]  ;;  %s4176_s30 = scalar_lea.vmem %s4104_s11, %s3655_s4 }
 0xb13   : > { %v2085_v21 = vmul.f32 1.442695, %v2082_v20 }
 0xb14   : > { %v2089_v22 = vpop.xlane.xlu0 %2088 }
 0xb15   : > { %3193 = vpow2.f32 %v2085_v21 }
 0xb16   : > { %3195 = vrcp.f32 %v2089_v22 }
 0xb18   : > { %v2100_v52 = vpop.permute.xlu0 %2099 }
 0xb19   : > { %v2105_v55 = vsel %vm1283_vm4, %v2100_v52, 0 }
 0xb1a   : > { %3043 = vmatpush3.bf16.msra.mxu0 %v2105_v55  ;;  %v3164_v55 = vld [vmem:[%s3695_s22 + $0x10] sm:$0xff]  }
 0xb1b   : > { %3054 = vmatprep.subr.bf16.mxu0 %v3368_v3 }
 0xb22   : > { %v3194_v23 = vpop.eup %3193 }
 0xb23   : > { %v3196_v24 = vpop.eup %3195  ;;  %v2090_v26 = vsel %vm1157_vm3, %v3194_v23, 0.0 }
 0xb24   : > { %2091 = vadd.xlane.f32.xlu1 %v2090_v26  ;;  %v2095_v25 = vmul.f32 %v3196_v24, %v3192_v62  ;;  %v2832_v62 = vld [vmem:[%s898_s6] ss:$0 sm:$0xff] }
 0xb25   : > { %v3166_v24 = vld [vmem:[%s3695_s22] sm:$0xff]  }
 0xb26   : > { %v2097_v44 = vpack.c.bf16 %v2095_v25, %v2095_v25  ;;  %v2834_v26 = vld [vmem:[%s4176_s30] ss:$0 sm:$0xff] }
 0xb28   : > { %3045 = vmatmul.mubr.msk.bf16.vlgmr.msra.gmra.mxu0 %vm1157_vm3, %v2097_v44 }
 0xb29   : > { %3056 = vmatprep.mubr.msk.bf16.mxu0 %vm3369_vm1, %v3368_v3  ;;  %3055 = vmatpush3.bf16.msra.mxu0 %v2200_v27 }
 0xb2a   : > { %3068 = vmatprep.subr.bf16.mxu0 %v3368_v3 }
 0xb35   : > { %2147 = vrot.lane.b32.xlu1 %v3796_v45, %s3373_s27 }
 0xbad   : > { %v2092_v28 = vpop.xlane.xlu1 %2091 }
 0xbae   : > { %3197 = vrcp.f32 %v2092_v28 }
 0xbb1   : > { %v2148_v29 = vpop.permute.xlu1 %2147 }
 0xbb2   : > { %v2153_v30 = vsel %vm1283_vm4, %v2148_v29, 0 }
 0xbb3   : > { %3049 = vmatpush3.bf16.msra.mxu1 %v2153_v30 }
 0xbb4   : > { %3060 = vmatprep.subr.bf16.mxu1 %v3368_v3 }
 0xbbb   : > { %v3198_v31 = vpop.eup %3197 }
 0xbbc   : > { %v2096_v32 = vmul.f32 %v3198_v31, %v3194_v23  ;;  %v3165_v23 = vld [vmem:[%s3695_s22 + $0x8] sm:$0xff]  }
 0xbbe   : > { %v2098_v36 = vpack.c.bf16 %v2096_v32, %v2096_v32 }
 0xbc0   : > { %3051 = vmatmul.mubr.msk.bf16.vlgmr.msra.gmra.mxu1 %vm1157_vm3, %v2098_v36 }
 0xbc1   : > { %3064 = vmatprep.mubr.msk.bf16.mxu1 %vm3369_vm1, %v3368_v3 }
 0xbe8   : > { %v2141_v45 = vpop.f32.mrf.mxu0 }
 0xbea   : > { %v3046_v33 = vpop.f32.mrf.mxu0 }
 0xbec   : > { %v2144_v35 = vpop.f32.mrf.mxu0 }
 0xbee   : > { %v3047_v37 = vpop.f32.mrf.mxu0 }
 0xc80   : > { %v2189_v38 = vpop.f32.mrf.mxu1 }
 0xc81   : > { %v2195_v39 = vpack.c.bf16 %v2189_v38, %v2141_v45 }
 0xc82   : > { %v3052_v40 = vpop.f32.mrf.mxu1 }
 0xc83   : > { %3057 = vmatmul.mubr.msk.bf16.vlgmr.msra.gmra.mxu0 %vm1157_vm3, %v2195_v39 }
 0xc84   : > { %v2192_v41 = vpop.f32.mrf.mxu1  ;;  %3076 = vmatprep.mubr.msk.bf16.mxu0 %vm3369_vm1, %v3368_v3 }
 0xc86   : > { %v3053_v42 = vpop.f32.mrf.mxu1 }
 0xd43   : > { %v2236_v43 = vpop.f32.mrf.mxu0 }
 0xd44   : > { %v2243_v46 = vadd.f32 %v2236_v43, %v1971_v53  ;;  %v3163_v53 = vld [vmem:[%s3695_s22 + $0x18] sm:$0xff]  }
 0xd45   : > { %v3058_v47 = vpop.f32.mrf.mxu0  ;;  %3069 = vmatpush3.bf16.msra.mxu0 %v3163_v53 }
 0xd46   : > { %v2245_v48 = vadd.f32 %v2243_v46, %v3724_v5  ;;  %3070 = vmatprep.subr.bf16.mxu0 %v3368_v3 }
 0xd47   : > { %v2239_v49 = vpop.f32.mrf.mxu0 }
 0xd48   : > { %v2244_v50 = vadd.f32 %v2239_v49, %v3971_v12  ;;  %v2249_v51 = vsel %vm959_vm2, %v2245_v48, 0.0 }
 0xd49   : > { %2250 = vadd.xlane.f32.xlu1 %v2249_v51  ;;  %v3059_v54 = vpop.f32.mrf.mxu0  ;;  %3071 = vmatpush3.bf16.msra.mxu0 %v3164_v55 }
 0xd4a   : > { %v2246_v56 = vadd.f32 %v2244_v50, %v3726_v6  ;;  %v3161_v6 = vld [vmem:[%s751_s19 + $0x8] sm:$0xff]   ;;  %3072 = vmatprep.subr.bf16.mxu0 %v3368_v3 }
 0xd4b   : > { %3061 = vmatpush3.bf16.msra.mxu1 %v3161_v6 }
 0xd4c   : > { %v2252_v57 = vsel %vm959_vm2, %v2246_v56, 0.0  ;;  %3062 = vmatprep.subr.bf16.mxu1 %v3368_v3 }
 0xd4d   : > { %2253 = vadd.xlane.f32.xlu0 %v2252_v57  ;;  %3073 = vmatpush3.bf16.msra.mxu0 %v3165_v23 }
 0xd4e   : > { %3074 = vmatprep.subr.bf16.mxu0 %v3368_v3  ;;  %v2838_v3 = vld [vmem:[%s895_s20] ss:$0 sm:$0xff] }
 0xd4f   : > { %3063 = vmatpush3.bf16.msra.mxu1 %v3162_v8 }
 0xd51   : > { %3075 = vmatpush3.bf16.msra.mxu0 %v3166_v24 }
 0xdd2   : > { %v2251_v58 = vpop.xlane.xlu1 %2250 }
 0xdd3   : > { %v2256_v59 = vmul.f32 0.03125, %v2251_v58 }
 0xdd5   : > { %v2258_v60 = vsub.f32 %v2245_v48, %v2256_v59 }
 0xdd6   : > { %v2254_v61 = vpop.xlane.xlu0 %2253 }
 0xdd7   : > { %v2257_v5 = vmul.f32 0.03125, %v2254_v61  ;;  %v2260_v63 = vmul.f32 %v2258_v60, %v2258_v60 }
 0xdd9   : > { %v2259_v1 = vsub.f32 %v2246_v56, %v2257_v5  ;;  %v2262_v2 = vsel %vm959_vm2, %v2260_v63, 0.0 }
 0xdda   : > { %2263 = vadd.xlane.f32.xlu0 %v2262_v2  ;;  %v2844_v2 = vld [vmem:[%s904_s21] ss:$0 sm:$0xff] }
 0xddb   : > { %v2261_v4 = vmul.f32 %v2259_v1, %v2259_v1 }
 0xddd   : > { %v2265_v7 = vsel %vm959_vm2, %v2261_v4, 0.0 }
 0xdde   : > { %2266 = vadd.xlane.f32.xlu1 %v2265_v7  ;;  %v2845_v7 = vld [vmem:[%s907_s29] ss:$0 sm:$0xff]  ;;  %s4178_s29 = sld [smem:[#allocation28_spill]] (!%p2846_p10) }
 0xe63   : > { %v2264_v10 = vpop.xlane.xlu0 %2263 }
 0xe64   : > { %v2268_v11 = vmul.f32 0.03125, %v2264_v10 }
 0xe66   : > { %v2270_v12 = vadd.f32 1e-05, %v2268_v11 }
 0xe67   : > { %v2267_v14 = vpop.xlane.xlu1 %2266 }
 0xe68   : > { %3199 = vrsqrt.f32 %v2270_v12  ;;  %v2269_v15 = vmul.f32 0.03125, %v2267_v14 }
 0xe6a   : > { %v2271_v16 = vadd.f32 1e-05, %v2269_v15 }
 0xe6c   : > { %3201 = vrsqrt.f32 %v2271_v16 }
 0xe75   : > { %v3200_v17 = vpop.eup %3199 }
 0xe76   : > { %v2274_v18 = vmul.f32 %v3200_v17, %v2258_v60 }
 0xe78   : > { %v2282_v9 = vmul.f32 %v2832_v62, %v2274_v18 }
 0xe79   : > { %v3202_v19 = vpop.eup %3201 }
 0xe7a   : > { %v2275_v0 = vmul.f32 %v3202_v19, %v2259_v1  ;;  %v2290_v21 = vadd.f32 %v2833_v13, %v2282_v9 }
 0xe7c   : > { %v2283_v20 = vmul.f32 %v2832_v62, %v2275_v0 }
 0xe7e   : > { %v2291_v22 = vadd.f32 %v2833_v13, %v2283_v20 }
 0xe80   : > { %v2292_v52 = vpack.c.bf16 %v2291_v22, %v2290_v21 }
 0xe82   : > { %3065 = vmatmul.mubr.msk.bf16.vlgmr.msra.gmra.mxu1 %vm959_vm2, %v2292_v52 }
 0xf42   : > { %v2353_v25 = vpop.f32.mrf.mxu1 }
 0xf43   : > { %v2354_v34 = vadd.f32 %v2834_v26, %v2353_v25 }
 0xf44   : > { %v3066_v44 = vpop.f32.mrf.mxu1 }
 0xf45   : > { %v2360_v30 = vmax.f32 %v2354_v34, 0.0 }
 0xf46   : > { %v2356_v27 = vpop.f32.mrf.mxu1 }
 0xf47   : > { %v2357_v28 = vadd.f32 %v2834_v26, %v2356_v27 }
 0xf48   : > { %v3067_v29 = vpop.f32.mrf.mxu1 }
 0xf49   : > { %v2361_v31 = vmax.f32 %v2357_v28, 0.0 }
 0xf4b   : > { %v2362_v32 = vpack.c.bf16 %v2361_v31, %v2360_v30 }
 0xf4d   : > { %3077 = vmatmul.mubr.msk.bf16.vlgmr.msra.gmra.mxu0 %vm2402_vm7, %v2362_v32 }
0x100d   : > { %v2440_v36 = vpop.f32.mrf.mxu0 }
0x100e   : > { %v2441_v45 = vadd.f32 %v2838_v3, %v2440_v36 }
0x100f   : > { %v3078_v33 = vpop.f32.mrf.mxu0 }
0x1010   : > { %v2447_v35 = vadd.f32 %v2441_v45, %v2290_v21 }
0x1011   : > { %v2443_v37 = vpop.f32.mrf.mxu0 }
0x1012   : > { %v2444_v38 = vadd.f32 %v2838_v3, %v2443_v37  ;;  %v2451_v39 = vsel %vm959_vm2, %v2447_v35, 0.0 }
0x1013   : > { %2452 = vadd.xlane.f32.xlu0 %v2451_v39  ;;  %v3079_v40 = vpop.f32.mrf.mxu0 }
0x1014   : > { %v2448_v41 = vadd.f32 %v2444_v38, %v2291_v22 }
0x1016   : > { %v2454_v42 = vsel %vm959_vm2, %v2448_v41, 0.0 }
0x1017   : > { %2455 = vadd.xlane.f32.xlu1 %v2454_v42 }
0x109c   : > { %v2453_v43 = vpop.xlane.xlu0 %2452 }
0x109d   : > { %v2457_v46 = vmul.f32 0.03125, %v2453_v43 }
0x109f   : > { %v2459_v47 = vsub.f32 %v2447_v35, %v2457_v46 }
0x10a0   : > { %v2456_v48 = vpop.xlane.xlu1 %2455 }
0x10a1   : > { %v2458_v49 = vmul.f32 0.03125, %v2456_v48  ;;  %v2461_v50 = vmul.f32 %v2459_v47, %v2459_v47 }
0x10a3   : > { %v2460_v51 = vsub.f32 %v2448_v41, %v2458_v49  ;;  %v2463_v54 = vsel %vm959_vm2, %v2461_v50, 0.0 }
0x10a4   : > { %2464 = vadd.xlane.f32.xlu0 %v2463_v54 }
0x10a5   : > { %v2462_v56 = vmul.f32 %v2460_v51, %v2460_v51 }
0x10a7   : > { %v2466_v57 = vsel %vm959_vm2, %v2462_v56, 0.0 }
0x10a8   : > { %2467 = vadd.xlane.f32.xlu1 %v2466_v57 }
0x112d   : > { %v2465_v58 = vpop.xlane.xlu0 %2464 }
0x112e   : > { %v2469_v59 = vmul.f32 0.03125, %v2465_v58 }
0x1130   : > { %v2471_v60 = vadd.f32 1e-05, %v2469_v59 }
0x1131   : > { %v2468_v61 = vpop.xlane.xlu1 %2467 }
0x1132   : > { %3203 = vrsqrt.f32 %v2471_v60  ;;  %v2470_v5 = vmul.f32 0.03125, %v2468_v61 }
0x1134   : > { %v2472_v63 = vadd.f32 1e-05, %v2470_v5 }
0x1136   : > { %3205 = vrsqrt.f32 %v2472_v63 }
0x113f   : > { %v3204_v1 = vpop.eup %3203 }
0x1140   : > { %v2475_v4 = vmul.f32 %v3204_v1, %v2459_v47 }
0x1142   : > { %v2483_v6 = vmul.f32 %v2844_v2, %v2475_v4 }
0x1143   : > { %v3206_v8 = vpop.eup %3205 }
0x1144   : > { %v2491_v53 = vadd.f32 %v2845_v7, %v2483_v6  ;;  %v2476_v10 = vmul.f32 %v3206_v8, %v2460_v51 }
0x1146   : > { %2493 = vst.msk [vmem:[#allocation8] sm:$0xff] %vm959_vm2, %v2491_v53  ;;  %v2484_v11 = vmul.f32 %v2844_v2, %v2476_v10  ;;  %2498 = sbr.rel (%p2846_p10) target bundleno = 4743 (0x1287), region = 120 }
0x1148   : > { %v2492_v12 = vadd.f32 %v2845_v7, %v2484_v11 }
0x114a   : > { %2494 = vst.msk [vmem:[#allocation8 + $0x8] sm:$0xff] %vm959_vm2, %v2492_v12 }
0x114b   : > { %v2847_v27 = vld [vmem:[%s4178_s29] ss:$0 sm:$0xff] }
0x114c   : > { %v2848_v29 = vld [vmem:[%s4179_s3] ss:$0 sm:$0xff] }
0x114d   : > { %v2499_v14 = vld [vmem:[#allocation8] sm:$0xff] }
0x114e   : > { %v2503_v16 = vsel %vm959_vm2, %v2499_v14, 0.0 }
0x114f   : > { %2504 = vadd.xlane.f32.xlu0 %v2503_v16 }
0x1151   : > { %v2500_v15 = vld [vmem:[#allocation8 + $0x8] sm:$0xff] }
0x1152   : > { %v2506_v17 = vsel %vm959_vm2, %v2500_v15, 0.0 }
0x1153   : > { %2507 = vadd.xlane.f32.xlu0 %v2506_v17 }
0x11d8   : > { %v2505_v18 = vpop.xlane.xlu0 %2504 }
0x11d9   : > { %v2509_v62 = vmul.f32 0.03125, %v2505_v18 }
0x11db   : > { %v2511_v19 = vsub.f32 %v2499_v14, %v2509_v62 }
0x11dc   : > { %v2508_v0 = vpop.xlane.xlu0 %2507 }
0x11dd   : > { %v2510_v9 = vmul.f32 0.03125, %v2508_v0  ;;  %v2513_v13 = vmul.f32 %v2511_v19, %v2511_v19 }
0x11df   : > { %v2512_v20 = vsub.f32 %v2500_v15, %v2510_v9  ;;  %v2515_v21 = vsel %vm959_vm2, %v2513_v13, 0.0 }
0x11e0   : > { %2516 = vadd.xlane.f32.xlu1 %v2515_v21 }
0x11e1   : > { %v2514_v22 = vmul.f32 %v2512_v20, %v2512_v20 }
0x11e3   : > { %v2518_v52 = vsel %vm959_vm2, %v2514_v22, 0.0 }
0x11e4   : > { %2519 = vadd.xlane.f32.xlu1 %v2518_v52 }
0x1269   : > { %v2517_v55 = vpop.xlane.xlu1 %2516 }
0x126a   : > { %v2521_v23 = vmul.f32 0.03125, %v2517_v55 }
0x126c   : > { %v2523_v24 = vadd.f32 1e-05, %v2521_v23 }
0x126d   : > { %v2520_v26 = vpop.xlane.xlu1 %2519 }
0x126e   : > { %3207 = vrsqrt.f32 %v2523_v24  ;;  %v2522_v25 = vmul.f32 0.03125, %v2520_v26 }
0x1270   : > { %v2524_v44 = vadd.f32 1e-05, %v2522_v25 }
0x1272   : > { %3209 = vrsqrt.f32 %v2524_v44 }
0x127b   : > { %v3208_v34 = vpop.eup %3207 }
0x127c   : > { %v2527_v28 = vmul.f32 %v3208_v34, %v2511_v19 }
0x127e   : > { %v2535_v30 = vmul.f32 %v2847_v27, %v2527_v28 }
0x127f   : > { %v3210_v31 = vpop.eup %3209 }
0x1280   : > { %v2543_v32 = vadd.f32 %v2848_v29, %v2535_v30  ;;  %v2528_v3 = vmul.f32 %v3210_v31, %v2512_v20 }
0x1282   : > { %2545 = vst.msk [vmem:[#allocation8] sm:$0xff] %vm959_vm2, %v2543_v32  ;;  %v2536_v36 = vmul.f32 %v2847_v27, %v2528_v3 }
0x1284   : > { %v2544_v45 = vadd.f32 %v2848_v29, %v2536_v36 }
0x1286   : > { %2546 = vst.msk [vmem:[#allocation8 + $0x8] sm:$0xff] %vm959_vm2, %v2544_v45 }
0x1287 PF: > { %s4180_s27 = sld [smem:[#allocation16_spill]]  ;;  %s3374_s24 = smov [#allocation8]  }
0x1288   : > { %s2553_s19 = sshll.u32 %s3374_s24, 4  ;;  %s2554_s19 = int_to_ptr.vmem [resolvable:$true] %s2553_s19 }
0x1289   : > { %s3293_s0 = scalar_lea.vmem %s2554_s19, 256  ;;  %p3300_p11 = scmp.lt.s32.totalorder %s2554_s19, %s2554_s19 }
0x128a   : > { %p3294_p2 = scmp.ne.s32.totalorder %s2554_s19, %s3293_s0  ;;  %p3301_p12 = scmp.lt.s32.totalorder %s3293_s0, %s3293_s0 }
0x128c   : > { %p3302_p3 = por %p3301_p12, %p3300_p11 }
0x128d   : > { %p3106_p0 = scmp.eq.s32.totalorder %s4180_s27, 1 }
0x128f   : > { %p3295_p6 = pnand %p3294_p2, %p3106_p0 }
0x1291   : > { %p3296_p9 = pneg %p3295_p6 }
0x1293   : > { %p3303_p4 = pnand %p3302_p3, %p3296_p9 }
0x1295   : > { %3306 = shalt.err (!%p3303_p4)
}
0x1296   : > { %s3375_s10 = smov 128   ;;  %s3376_s6 = smov 8  }
0x1297   : > { %s4181_s12 = sld [smem:[#allocation30_spill]] }
0x129d   : > { %3089 = dma.vmem_to_hbm [thread:$0]  (%p3106_p0), %s2554_s19, 256, %s4181_s12, [#allocation4], %s3375_s10, %s3375_s10, %s3376_s6  }
0x129e   : > { %3342 = dma.done.wait (%p3106_p0), [#allocation4], 256  }
0x129f   : > { %3344 = vsyncadd (%p3106_p0), [#allocation4], 4294967040 }
0x12a0 PF: > { %s4182_s24 = sld [smem:[#allocation14_spill]] }
0x12a1   : > { %s4183_s1 = sld [smem:[#allocation12_spill]] }
0x12a2   : > { %s4184_s22 = sld [smem:[#allocation13_spill]] }
0x12a3   : > { %s4185_s23 = sld [smem:[#allocation15_spill]] }
0x12a6   : > { %p32_p5 = scmp.ge.s32.totalorder %s4182_s24, 4  }
0x12a8   :  { %34 = sbr.rel (!%p32_p5) target bundleno = 18 (0x12), region = 203 }
0x12ad   :  { %2569 = vsyncpa [#allocation3], 1 }
0x12ae   :  { %2571 = vsyncpa [#allocation3 + $0x1], 1 }
0x12af   :  { %2572 = vsyncpa [#allocation6], 1 }
0x12b0   :  { %2574 = vsyncpa [#allocation6 + $0x1], 1 }
0x12b1   :  { %2575 = vsyncpa [#allocation4], 1 }
0x12b2   :  { %2577 = vsyncpa [#allocation4 + $0x1], 1 }

</bundles_post_ra>
